<compile_context>
chip_gen: v6e
topology: v6e:2x2x1
jax: 0.10.0
libtpu: 0.0.40
codegen_flags: <defaults>
</compile_context>

<pallas_src>
import functools

import numpy as np

import jax
import jax.numpy as jnp
from jax import lax
from jax.experimental import pallas as pl
from jax.experimental.pallas import tpu as pltpu

EPS = 1e-5
SLOT = 8    # sublane-aligned row slot inside the packed per-channel scalar operand
CPAD = 8    # conv1x1 weight rows padded to a full sublane group


# ---------------------------------------------------------------------------
# Shared per-image block math.  Traced inside the Pallas kernel (p1/p2 = VMEM
# scratch refs, pltpu.roll) and reused as a plain-JAX mirror for verification
# (p1/p2 = None, jnp.roll).  Activation layout: (C, H*W), f32.
# ---------------------------------------------------------------------------

def _block_math(x, l1, l2, l3, up, m1, m2, w1, w2, wu,
                s1, t1, b1, s2, t2, b2, s3, t3, bu,
                *, W, W2, Cin, Cout, orig_relus, precision, p1=None, p2=None):
    in_kernel = p1 is not None
    dot = functools.partial(jnp.dot, preferred_element_type=jnp.float32,
                            precision=precision)
    mxu_dtype = up.dtype            # bf16 for the big fused upsample matmul

    def shifted(xx, delta):
        n = xx.shape[1]
        s = (-delta) % n
        if s == 0:
            return xx
        # XLU lane rotate in-kernel; identical-semantics jnp.roll in the mirror.
        return pltpu.roll(xx, s, axis=1) if in_kernel else jnp.roll(xx, s, axis=1)

    def conv3x3(xx, wmat, bias, ww, mask, scratch):
        # In-kernel im2col: 9 shifted taps, masked per tap (zero padding + kills
        # any intra-image wrap-around of the cyclic rotate), written 8-row-aligned
        # into the VMEM patch scratch, then one MXU matmul (norm scale is folded
        # into wmat, norm bias added from the packed scalar operand).
        taps = []
        for t in range(9):
            kh, kw = divmod(t, 3)
            delta = (kh - 1) * ww + (kw - 1)
            tap = shifted(xx, delta) * mask[t:t + 1, :]
            if scratch is not None:
                scratch[t * Cin:(t + 1) * Cin, :] = tap
            else:
                taps.append(tap)
        patches = scratch[...] if scratch is not None else jnp.concatenate(taps, 0)
        return dot(wmat, patches) + bias

    def side_comb(xx, lat, s, t):                 # SideAndComb
        side = lat * s + t                        # ChannelModulation + eval-BN affine
        if not orig_relus:
            side = jnp.maximum(side, 0.0)
        return jnp.maximum(xx + side, 0.0)

    x1 = side_comb(x, l1, s1, t1)                             # lat1
    y = jnp.maximum(conv3x3(x1, w1, b1, W, m1, p1), 0.0)      # conv1 + norm + relu1
    x2 = side_comb(y, l2, s2, t2)                             # lat2

    # Identity conv1x1 BEFORE upsampling (wu is zero-padded to CPAD rows), then ONE
    # fused bilinear-upsample matmul for both the conv2 input and the identity path.
    z1 = dot(wu, x1)                                          # (CPAD, HW)
    cat = jnp.concatenate([x2, z1], axis=0)                   # (Cin+CPAD, HW), aligned
    cat_up = dot(cat.astype(mxu_dtype), up.astype(mxu_dtype))  # bf16 MXU, f32 acc
    x2_up = cat_up[:Cin, :]
    iden = cat_up[Cin:Cin + Cout, :] + bu                     # conv1x1 + norm identity

    y2 = conv3x3(x2_up, w2, b2, W2, m2, p2)                   # conv2 + norm
    if orig_relus:
        y2 = jnp.maximum(y2, 0.0)                             # relu2
    x3 = side_comb(y2, l3, s3, t3)                            # lat3
    out = jnp.maximum(x3 + iden, 0.0)                         # + identity, relu3
    return out, x1, x2, x3


# ---------------------------------------------------------------------------
# Pallas kernel: one grid step == one image (grid=(B,), "parallel" -> both v7x
# TensorCores busy, and DMA of step b+1 overlaps compute of step b).
# ---------------------------------------------------------------------------

def _block_td_kernel(x_ref, l1_ref, l2_ref, l3_ref, up_ref, m1_ref, m2_ref,
                     w1_ref, w2_ref, wu_ref, pk_ref,
                     out_ref, x1_ref, x2_ref, x3_ref,
                     p1_ref, p2_ref, *, W, W2, Cin, Cout, orig_relus):
    pk = pk_ref[...]
    g = lambda i, c: pk[i * SLOT:i * SLOT + c, :]
    s1, t1, b1 = g(0, Cin), g(1, Cin), g(2, Cin)
    s2, t2, b2 = g(3, Cin), g(4, Cin), g(5, Cout)
    s3, t3, bu = g(6, Cout), g(7, Cout), g(8, Cout)

    out, x1, x2, x3 = _block_math(
        x_ref[...], l1_ref[...], l2_ref[...], l3_ref[...],
        up_ref[...], m1_ref[...], m2_ref[...],
        w1_ref[...], w2_ref[...], wu_ref[...],
        s1, t1, b1, s2, t2, b2, s3, t3, bu,
        W=W, W2=W2, Cin=Cin, Cout=Cout, orig_relus=orig_relus,
        precision=None, p1=p1_ref, p2=p2_ref)

    out_ref[...] = out
    x1_ref[...] = x1
    x2_ref[...] = x2
    x3_ref[...] = x3


def _pallas_block_td(ops, *, B, Cin, Cout, H, W, H2, W2, orig_relus):
    HW, HW2 = H * W, H2 * W2
    assert HW % 128 == 0 and HW2 % 128 == 0, "per-image lane width must be 128-dense"
    kernel = functools.partial(_block_td_kernel, W=W, W2=W2, Cin=Cin, Cout=Cout,
                               orig_relus=orig_relus)
    per_img = lambda C, S: pl.BlockSpec((C, S), lambda b: (0, b))
    shared = lambda shape: pl.BlockSpec(shape, lambda b: (0, 0))
    up, pk = ops[4], ops[10]

    in_specs = [
        per_img(Cin, HW), per_img(Cin, HW), per_img(Cin, HW), per_img(Cout, HW2),
        shared(up.shape),                      # per-image bilinear operator (bf16)
        shared((9, HW)), shared((9, HW2)),     # per-image conv validity masks
        shared((Cin, 9 * Cin)), shared((Cout, 9 * Cin)), shared((CPAD, Cin)),
        shared(pk.shape),                      # packed per-channel scalars
    ]
    out_shape = (jax.ShapeDtypeStruct((Cout, B * HW2), jnp.float32),   # out
                 jax.ShapeDtypeStruct((Cin, B * HW), jnp.float32),     # x1 (lateral)
                 jax.ShapeDtypeStruct((Cin, B * HW), jnp.float32),     # x2 (lateral)
                 jax.ShapeDtypeStruct((Cout, B * HW2), jnp.float32))   # x3 (lateral)
    out_specs = (per_img(Cout, HW2), per_img(Cin, HW), per_img(Cin, HW),
                 per_img(Cout, HW2))

    return pl.pallas_call(
        kernel,
        out_shape=out_shape,
        grid=(B,),
        in_specs=in_specs,
        out_specs=out_specs,
        scratch_shapes=[pltpu.VMEM((9 * Cin, HW), jnp.float32),    # conv1 patches
                        pltpu.VMEM((9 * Cin, HW2), jnp.float32)],  # conv2 patches
        compiler_params=pltpu.CompilerParams(dimension_semantics=("parallel",)),
    )(*ops)


# ---------------------------------------------------------------------------
# Setup-time constants (built ONCE, outside the traced forward).
# TODO(synk): for production spatial sizes use a separable (H,H2)+(W,W2) operator
#             and tile the post-upsample axis (v7x: 64 MiB VMEM).
# ---------------------------------------------------------------------------

def _bilinear_up_matrix(H, W, H2, W2):
    """Exact per-image matrix of nn.Upsample(size, 'bilinear', align_corners=False)
    (== jax.image.resize for upsampling), extracted by linearity: x_up = x @ UT."""
    eye = jnp.eye(H * W, dtype=jnp.float32).reshape(H, W, H * W)
    U = jax.image.resize(eye, (H2, W2, H * W), method="bilinear")
    return U.reshape(H2 * W2, H * W).T                       # (H*W, H2*W2)


def _conv_valid_mask(H, W):
    """(9, H*W) 0/1 mask: tap (kh,kw) valid iff (h+kh-1, w+kw-1) lies in-image."""
    hh, ww = np.meshgrid(np.arange(H), np.arange(W), indexing="ij")
    rows = []
    for kh in range(3):
        for kw in range(3):
            v = ((hh + kh - 1 >= 0) & (hh + kh - 1 < H) &
                 (ww + kw - 1 >= 0) & (ww + kw - 1 < W))
            rows.append(v.reshape(1, H * W).astype(np.float32))
    return jnp.asarray(np.concatenate(rows, axis=0))


def _fold_params(p, Cin, Cout):
    """Fold eval-BN scales into conv weights; pad the 1x1 weight to CPAD rows."""
    w1 = p["conv1_w"].reshape(9 * Cin, Cin).T * p["n1_s"][:, None]    # (Cin, 9Cin)
    w2 = p["conv2_w"].reshape(9 * Cin, Cout).T * p["n2_s"][:, None]   # (Cout, 9Cin)
    wu = p["up_w"].T * p["nu_s"][:, None]                             # (Cout, Cin)
    wu = jnp.concatenate([wu, jnp.zeros((CPAD - Cout, Cin), jnp.float32)], axis=0)
    return w1, w2, wu


def _pack_scalars(p, Cin, Cout):
    """All per-channel biases / lateral scales in ONE (9*SLOT, 1) operand."""
    vecs = [p["lat1_w"] * p["lat1_s"], p["lat1_b"], p["n1_b"],
            p["lat2_w"] * p["lat2_s"], p["lat2_b"], p["n2_b"],
            p["lat3_w"] * p["lat3_s"], p["lat3_b"], p["nu_b"]]
    pk = np.zeros((len(vecs) * SLOT, 1), np.float32)
    for i, v in enumerate(vecs):
        pk[i * SLOT:i * SLOT + v.shape[0], 0] = np.asarray(v)
    return jnp.asarray(pk)


def prepare_constants(p, *, Cin, Cout, H, W, size, up_dtype=jnp.bfloat16):
    assert Cin <= SLOT and Cout <= CPAD
    H2, W2 = size
    w1, w2, wu = _fold_params(p, Cin, Cout)
    return dict(
        up=_bilinear_up_matrix(H, W, H2, W2).astype(up_dtype),
        m1=_conv_valid_mask(H, W), m2=_conv_valid_mask(H2, W2),
        w1=w1, w2=w2, wu=wu, pk=_pack_scalars(p, Cin, Cout))


# ---------------------------------------------------------------------------
# Layout helpers + external forward (NCHW in / NCHW out, like PyTorch)
# ---------------------------------------------------------------------------

def _to_cm(t_nchw):                       # (B,C,H,W) -> (C, B*H*W)
    c = t_nchw.shape[1]
    return jnp.transpose(t_nchw, (1, 0, 2, 3)).reshape(c, -1)


def _from_cm(t_cm, B, H, W):              # (C, B*H*W) -> (B,C,H,W)
    c = t_cm.shape[0]
    return jnp.transpose(t_cm.reshape(c, B, H, W), (1, 0, 2, 3))


def basic_block_td_forward(consts, x_nchw, flag, laterals_in, *, size,
                           orig_relus=False):
    # TODO(synk): task-conditioned norm parameters not modeled; `flag` ignored.
    del flag
    lat1, lat2, lat3 = laterals_in
    B, Cin, H, W = x_nchw.shape
    Cout = lat3.shape[1]
    H2, W2 = size
    ops = (_to_cm(x_nchw), _to_cm(lat1), _to_cm(lat2), _to_cm(lat3),
           consts["up"], consts["m1"], consts["m2"],
           consts["w1"], consts["w2"], consts["wu"], consts["pk"])
    out, x1, x2, x3 = _pallas_block_td(ops, B=B, Cin=Cin, Cout=Cout, H=H, W=W,
                                       H2=H2, W2=W2, orig_relus=orig_relus)
    return (_from_cm(out, B, H2, W2),
            [_from_cm(x3, B, H2, W2), _from_cm(x2, B, H, W), _from_cm(x1, B, H, W)])


# ---------------------------------------------------------------------------
# Plain-JAX mirror of the decomposition (same folded operands / casts) and a
# module-faithful reference (lax.conv + bilinear resize + eval-BN affine).
# ---------------------------------------------------------------------------

def decomposed_forward(consts, x_nchw, laterals_in, *, size, orig_relus=False,
                       precision=None):
    lat1, lat2, lat3 = laterals_in
    B, Cin, H, W = x_nchw.shape
    Cout = lat3.shape[1]
    H2, W2 = size
    HW, HW2 = H * W, H2 * W2
    xc, l1c, l2c, l3c = map(_to_cm, (x_nchw, lat1, lat2, lat3))
    pk = consts["pk"]
    g = lambda i, c: pk[i * SLOT:i * SLOT + c, :]
    sc = (g(0, Cin), g(1, Cin), g(2, Cin), g(3, Cin), g(4, Cin),
          g(5, Cout), g(6, Cout), g(7, Cout), g(8, Cout))
    res = [[], [], [], []]
    for b in range(B):
        o = _block_math(xc[:, b * HW:(b + 1) * HW], l1c[:, b * HW:(b + 1) * HW],
                        l2c[:, b * HW:(b + 1) * HW], l3c[:, b * HW2:(b + 1) * HW2],
                        consts["up"], consts["m1"], consts["m2"],
                        consts["w1"], consts["w2"], consts["wu"], *sc,
                        W=W, W2=W2, Cin=Cin, Cout=Cout, orig_relus=orig_relus,
                        precision=precision)
        for lst, v in zip(res, o):
            lst.append(v)
    out, x1, x2, x3 = [jnp.concatenate(v, axis=1) for v in res]
    return (_from_cm(out, B, H2, W2),
            [_from_cm(x3, B, H2, W2), _from_cm(x2, B, H, W), _from_cm(x1, B, H, W)])


def ref_module_forward(p, x_nchw, flag, laterals_in, *, size, orig_relus=False,
                       precision=jax.lax.Precision.HIGHEST):
    del flag
    to_nhwc = lambda t: jnp.transpose(t, (0, 2, 3, 1))
    to_nchw = lambda t: jnp.transpose(t, (0, 3, 1, 2))
    x = to_nhwc(x_nchw)
    l1, l2, l3 = [to_nhwc(t) for t in laterals_in]
    B = x.shape[0]

    aff = lambda t, s, b: t * s.reshape(1, 1, 1, -1) + b.reshape(1, 1, 1, -1)

    def sidecomb(xx, lat, sw, s, b):
        side = aff(lat * sw.reshape(1, 1, 1, -1), s, b)
        if not orig_relus:
            side = jnp.maximum(side, 0.0)
        return jnp.maximum(xx + side, 0.0)

    conv3 = lambda t, w: lax.conv_general_dilated(
        t, w, (1, 1), "SAME", dimension_numbers=("NHWC", "HWIO", "NHWC"),
        precision=precision)
    resize = lambda t: jax.image.resize(
        t, (B, size[0], size[1], t.shape[-1]), method="bilinear")

    x1 = sidecomb(x, l1, p["lat1_w"], p["lat1_s"], p["lat1_b"])
    inp = x1
    y = jnp.maximum(aff(conv3(x1, p["conv1_w"]), p["n1_s"], p["n1_b"]), 0.0)
    x2 = sidecomb(y, l2, p["lat2_w"], p["lat2_s"], p["lat2_b"])
    y2 = aff(conv3(resize(x2), p["conv2_w"]), p["n2_s"], p["n2_b"])
    if orig_relus:
        y2 = jnp.maximum(y2, 0.0)
    x3 = sidecomb(y2, l3, p["lat3_w"], p["lat3_s"], p["lat3_b"])
    iden = aff(jnp.einsum("bhwc,cd->bhwd", resize(inp), p["up_w"],
                          precision=precision),
               p["nu_s"], p["nu_b"])
    out = jnp.maximum(x3 + iden, 0.0)
    return to_nchw(out), [to_nchw(x3), to_nchw(x2), to_nchw(x1)]


# ---------------------------------------------------------------------------
# Deterministic parameters
# ---------------------------------------------------------------------------

def init_params(key, cin, cout):
    ks = jax.random.split(key, 20)
    nrm = lambda k, shape: 0.1 * jax.random.normal(k, shape, jnp.float32)

    def affine(kg, kb, c):
        gamma = 1.0 + 0.1 * jax.random.normal(kg, (c,), jnp.float32)
        beta = 0.1 * jax.random.normal(kb, (c,), jnp.float32)
        return gamma / jnp.sqrt(1.0 + EPS), beta   # BN eval: mean=0, var=1

    p = {}
    p["lat1_w"] = nrm(ks[0], (cin,)); p["lat1_s"], p["lat1_b"] = affine(ks[1], ks[2], cin)
    p["lat2_w"] = nrm(ks[3], (cin,)); p["lat2_s"], p["lat2_b"] = affine(ks[4], ks[5], cin)
    p["lat3_w"] = nrm(ks[6], (cout,)); p["lat3_s"], p["lat3_b"] = affine(ks[7], ks[8], cout)
    p["conv1_w"] = nrm(ks[9], (3, 3, cin, cin)); p["n1_s"], p["n1_b"] = affine(ks[10], ks[11], cin)
    p["conv2_w"] = nrm(ks[12], (3, 3, cin, cout)); p["n2_s"], p["n2_b"] = affine(ks[13], ks[14], cout)
    p["up_w"] = nrm(ks[15], (cin, cout)); p["nu_s"], p["nu_b"] = affine(ks[16], ks[17], cout)
    return p


# ---------------------------------------------------------------------------
# main
# ---------------------------------------------------------------------------

if __name__ == "__main__":
    B, Cin, Cout, H, W = 2, 8, 4, 16, 16
    stride = 2
    size = (H * stride, W * stride)            # inshapes[index-1][0][1:]

    key = jax.random.PRNGKey(0)
    kp, kx, k1, k2, k3 = jax.random.split(key, 5)
    params = init_params(kp, Cin, Cout)

    x = jax.random.normal(kx, (B, Cin, H, W), jnp.float32)
    lateral1 = jax.random.normal(k1, (B, Cin, H, W), jnp.float32)
    lateral2 = jax.random.normal(k2, (B, Cin, H, W), jnp.float32)
    lateral3 = jax.random.normal(k3, (B, Cout, size[0], size[1]), jnp.float32)
    flag = jnp.zeros((B, 4), jnp.float32)      # task flag (accepted, unused)

    # Setup-time constants: folded weights, per-image bilinear operator, masks,
    # packed scalars.  Built once, not inside the traced forward.
    consts = prepare_constants(params, Cin=Cin, Cout=Cout, H=H, W=W, size=size,
                               up_dtype=jnp.bfloat16)

    fwd = jax.jit(functools.partial(basic_block_td_forward, size=size,
                                    orig_relus=False))
    out, laterals_out = fwd(consts, x, flag, (lateral1, lateral2, lateral3))
    jax.block_until_ready(out)
    jax.block_until_ready(laterals_out)

    assert out.shape == (B, Cout, size[0], size[1])
    assert laterals_out[0].shape == (B, Cout, size[0], size[1])
    assert laterals_out[1].shape == (B, Cin, H, W)
    assert laterals_out[2].shape == (B, Cin, H, W)

    # (1) Pallas kernel == identical folded math traced through XLA on the same
    #     operands (same bf16 casts, default MXU precision on both sides).
    d_out, d_lats = decomposed_forward(consts, x, (lateral1, lateral2, lateral3),
                                       size=size, orig_relus=False, precision=None)
    for got, want in zip((out, *laterals_out), (d_out, *d_lats)):
        assert got.shape == want.shape
        assert jnp.allclose(got, want, atol=5e-3, rtol=1e-2)

    # (2) The folded/fused decomposition (pure f32, HIGHEST precision) == the
    #     module-faithful reference (lax.conv + bilinear resize + eval-BN affine)
    #     -- validates the reordered/fused algebra exactly.
    hi = jax.lax.Precision.HIGHEST
    consts32 = prepare_constants(params, Cin=Cin, Cout=Cout, H=H, W=W, size=size,
                                 up_dtype=jnp.float32)
    h_out, h_lats = decomposed_forward(consts32, x, (lateral1, lateral2, lateral3),
                                       size=size, orig_relus=False, precision=hi)
    r_out, r_lats = ref_module_forward(params, x, flag,
                                       (lateral1, lateral2, lateral3),
                                       size=size, orig_relus=False, precision=hi)
    for got, want in zip((h_out, *h_lats), (r_out, *r_lats)):
        assert got.shape == want.shape
        assert jnp.allclose(got, want, atol=1e-4, rtol=1e-4)

    print("KERNEL_OK")
</pallas_src>

<mosaic_0001>
module attributes {stable_mosaic.version = 11 : i64} {
  func.func @_block_td_kernel(%arg0: i32, %arg1: memref<8x256xf32, #tpu.memory_space<vmem>>, %arg2: memref<8x256xf32, #tpu.memory_space<vmem>>, %arg3: memref<8x256xf32, #tpu.memory_space<vmem>>, %arg4: memref<4x1024xf32, #tpu.memory_space<vmem>>, %arg5: memref<256x1024xbf16, #tpu.memory_space<vmem>>, %arg6: memref<9x256xf32, #tpu.memory_space<vmem>>, %arg7: memref<9x1024xf32, #tpu.memory_space<vmem>>, %arg8: memref<8x72xf32, #tpu.memory_space<vmem>>, %arg9: memref<4x72xf32, #tpu.memory_space<vmem>>, %arg10: memref<8x8xf32, #tpu.memory_space<vmem>>, %arg11: memref<72x1xf32, #tpu.memory_space<vmem>>, %arg12: memref<4x1024xf32, #tpu.memory_space<vmem>>, %arg13: memref<8x256xf32, #tpu.memory_space<vmem>>, %arg14: memref<8x256xf32, #tpu.memory_space<vmem>>, %arg15: memref<4x1024xf32, #tpu.memory_space<vmem>>, %arg16: memref<72x256xf32, #tpu.memory_space<vmem>>, %arg17: memref<72x1024xf32, #tpu.memory_space<vmem>>) attributes {dimension_semantics = [#tpu.dimension_semantics<parallel>], iteration_bounds = array<i64: 2>, scalar_prefetch = 0 : i64, scratch_operands = 2 : i64, tpu.core_type = #tpu.core_type<tc>, window_params = [{transform_indices = @transform_0, window_bounds = array<i64: 8, 256>}, {transform_indices = @transform_1, window_bounds = array<i64: 8, 256>}, {transform_indices = @transform_2, window_bounds = array<i64: 8, 256>}, {transform_indices = @transform_3, window_bounds = array<i64: 4, 1024>}, {pipeline_mode = #tpu.pipeline_mode<synchronous>, transform_indices = @transform_4, window_bounds = array<i64: 256, 1024>}, {pipeline_mode = #tpu.pipeline_mode<synchronous>, transform_indices = @transform_5, window_bounds = array<i64: 9, 256>}, {pipeline_mode = #tpu.pipeline_mode<synchronous>, transform_indices = @transform_6, window_bounds = array<i64: 9, 1024>}, {pipeline_mode = #tpu.pipeline_mode<synchronous>, transform_indices = @transform_7, window_bounds = array<i64: 8, 72>}, {pipeline_mode = #tpu.pipeline_mode<synchronous>, transform_indices = @transform_8, window_bounds = array<i64: 4, 72>}, {pipeline_mode = #tpu.pipeline_mode<synchronous>, transform_indices = @transform_9, window_bounds = array<i64: 8, 8>}, {pipeline_mode = #tpu.pipeline_mode<synchronous>, transform_indices = @transform_10, window_bounds = array<i64: 72, 1>}, {transform_indices = @transform_11, window_bounds = array<i64: 4, 1024>}, {transform_indices = @transform_12, window_bounds = array<i64: 8, 256>}, {transform_indices = @transform_13, window_bounds = array<i64: 8, 256>}, {transform_indices = @transform_14, window_bounds = array<i64: 4, 1024>}]} {
    %c0 = arith.constant 0 : index
    %c0_0 = arith.constant 0 : index
    %0 = vector.load %arg11[%c0, %c0_0] : memref<72x1xf32, #tpu.memory_space<vmem>>, vector<72x1xf32>
    %1 = vector.extract_strided_slice %0 {offsets = [0, 0], sizes = [8, 1], strides = [1, 1]} : vector<72x1xf32> to vector<8x1xf32>
    %2 = vector.extract_strided_slice %0 {offsets = [8, 0], sizes = [8, 1], strides = [1, 1]} : vector<72x1xf32> to vector<8x1xf32>
    %3 = vector.extract_strided_slice %0 {offsets = [16, 0], sizes = [8, 1], strides = [1, 1]} : vector<72x1xf32> to vector<8x1xf32>
    %4 = vector.extract_strided_slice %0 {offsets = [24, 0], sizes = [8, 1], strides = [1, 1]} : vector<72x1xf32> to vector<8x1xf32>
    %5 = vector.extract_strided_slice %0 {offsets = [32, 0], sizes = [8, 1], strides = [1, 1]} : vector<72x1xf32> to vector<8x1xf32>
    %6 = vector.extract_strided_slice %0 {offsets = [40, 0], sizes = [4, 1], strides = [1, 1]} : vector<72x1xf32> to vector<4x1xf32>
    %7 = vector.extract_strided_slice %0 {offsets = [48, 0], sizes = [4, 1], strides = [1, 1]} : vector<72x1xf32> to vector<4x1xf32>
    %8 = vector.extract_strided_slice %0 {offsets = [56, 0], sizes = [4, 1], strides = [1, 1]} : vector<72x1xf32> to vector<4x1xf32>
    %9 = vector.extract_strided_slice %0 {offsets = [64, 0], sizes = [4, 1], strides = [1, 1]} : vector<72x1xf32> to vector<4x1xf32>
    %c0_1 = arith.constant 0 : index
    %c0_2 = arith.constant 0 : index
    %10 = vector.load %arg1[%c0_1, %c0_2] : memref<8x256xf32, #tpu.memory_space<vmem>>, vector<8x256xf32>
    %c0_3 = arith.constant 0 : index
    %c0_4 = arith.constant 0 : index
    %11 = vector.load %arg2[%c0_3, %c0_4] : memref<8x256xf32, #tpu.memory_space<vmem>>, vector<8x256xf32>
    %c0_5 = arith.constant 0 : index
    %c0_6 = arith.constant 0 : index
    %12 = vector.load %arg3[%c0_5, %c0_6] : memref<8x256xf32, #tpu.memory_space<vmem>>, vector<8x256xf32>
    %c0_7 = arith.constant 0 : index
    %c0_8 = arith.constant 0 : index
    %13 = vector.load %arg4[%c0_7, %c0_8] : memref<4x1024xf32, #tpu.memory_space<vmem>>, vector<4x1024xf32>
    %c0_9 = arith.constant 0 : index
    %c0_10 = arith.constant 0 : index
    %14 = vector.load %arg5[%c0_9, %c0_10] : memref<256x1024xbf16, #tpu.memory_space<vmem>>, vector<256x1024xbf16>
    %c0_11 = arith.constant 0 : index
    %c0_12 = arith.constant 0 : index
    %15 = vector.load %arg6[%c0_11, %c0_12] : memref<9x256xf32, #tpu.memory_space<vmem>>, vector<9x256xf32>
    %c0_13 = arith.constant 0 : index
    %c0_14 = arith.constant 0 : index
    %16 = vector.load %arg7[%c0_13, %c0_14] : memref<9x1024xf32, #tpu.memory_space<vmem>>, vector<9x1024xf32>
    %c0_15 = arith.constant 0 : index
    %c0_16 = arith.constant 0 : index
    %17 = vector.load %arg8[%c0_15, %c0_16] : memref<8x72xf32, #tpu.memory_space<vmem>>, vector<8x72xf32>
    %c0_17 = arith.constant 0 : index
    %c0_18 = arith.constant 0 : index
    %18 = vector.load %arg9[%c0_17, %c0_18] : memref<4x72xf32, #tpu.memory_space<vmem>>, vector<4x72xf32>
    %c0_19 = arith.constant 0 : index
    %c0_20 = arith.constant 0 : index
    %19 = vector.load %arg10[%c0_19, %c0_20] : memref<8x8xf32, #tpu.memory_space<vmem>>, vector<8x8xf32>
    %20 = vector.broadcast %1 : vector<8x1xf32> to vector<8x256xf32>
    %21 = arith.mulf %11, %20 : vector<8x256xf32>
    %22 = vector.broadcast %2 : vector<8x1xf32> to vector<8x256xf32>
    %23 = arith.addf %21, %22 : vector<8x256xf32>
    %cst = arith.constant 0.000000e+00 : f32
    %24 = vector.broadcast %cst : f32 to vector<8x256xf32>
    %25 = arith.maximumf %23, %24 : vector<8x256xf32>
    %26 = arith.addf %10, %25 : vector<8x256xf32>
    %cst_21 = arith.constant 0.000000e+00 : f32
    %27 = vector.broadcast %cst_21 : f32 to vector<8x256xf32>
    %28 = arith.maximumf %26, %27 : vector<8x256xf32>
    %c17_i32 = arith.constant 17 : i32
    %29 = tpu.dynamic_rotate %28 by %c17_i32 dim 1 : vector<8x256xf32>, i32 -> vector<8x256xf32>
    %30 = vector.extract_strided_slice %15 {offsets = [0, 0], sizes = [1, 256], strides = [1, 1]} : vector<9x256xf32> to vector<1x256xf32>
    %31 = vector.broadcast %30 : vector<1x256xf32> to vector<8x256xf32>
    %32 = arith.mulf %29, %31 : vector<8x256xf32>
    %c0_22 = arith.constant 0 : index
    %c0_23 = arith.constant 0 : index
    %33 = vector.load %arg16[%c0_22, %c0_23] : memref<72x256xf32, #tpu.memory_space<vmem>>, vector<8x256xf32>
    tpu.vector_store %arg16[%c0_22, %c0_23], %32 {strides = array<i32>} : memref<72x256xf32, #tpu.memory_space<vmem>>, vector<8x256xf32>,
    %c16_i32 = arith.constant 16 : i32
    %34 = tpu.dynamic_rotate %28 by %c16_i32 dim 1 : vector<8x256xf32>, i32 -> vector<8x256xf32>
    %35 = vector.extract_strided_slice %15 {offsets = [1, 0], sizes = [1, 256], strides = [1, 1]} : vector<9x256xf32> to vector<1x256xf32>
    %36 = vector.broadcast %35 : vector<1x256xf32> to vector<8x256xf32>
    %37 = arith.mulf %34, %36 : vector<8x256xf32>
    %c8 = arith.constant 8 : index
    %c0_24 = arith.constant 0 : index
    %38 = vector.load %arg16[%c8, %c0_24] : memref<72x256xf32, #tpu.memory_space<vmem>>, vector<8x256xf32>
    tpu.vector_store %arg16[%c8, %c0_24], %37 {strides = array<i32>} : memref<72x256xf32, #tpu.memory_space<vmem>>, vector<8x256xf32>,
    %c15_i32 = arith.constant 15 : i32
    %39 = tpu.dynamic_rotate %28 by %c15_i32 dim 1 : vector<8x256xf32>, i32 -> vector<8x256xf32>
    %40 = vector.extract_strided_slice %15 {offsets = [2, 0], sizes = [1, 256], strides = [1, 1]} : vector<9x256xf32> to vector<1x256xf32>
    %41 = vector.broadcast %40 : vector<1x256xf32> to vector<8x256xf32>
    %42 = arith.mulf %39, %41 : vector<8x256xf32>
    %c16 = arith.constant 16 : index
    %c0_25 = arith.constant 0 : index
    %43 = vector.load %arg16[%c16, %c0_25] : memref<72x256xf32, #tpu.memory_space<vmem>>, vector<8x256xf32>
    tpu.vector_store %arg16[%c16, %c0_25], %42 {strides = array<i32>} : memref<72x256xf32, #tpu.memory_space<vmem>>, vector<8x256xf32>,
    %c1_i32 = arith.constant 1 : i32
    %44 = tpu.dynamic_rotate %28 by %c1_i32 dim 1 : vector<8x256xf32>, i32 -> vector<8x256xf32>
    %45 = vector.extract_strided_slice %15 {offsets = [3, 0], sizes = [1, 256], strides = [1, 1]} : vector<9x256xf32> to vector<1x256xf32>
    %46 = vector.broadcast %45 : vector<1x256xf32> to vector<8x256xf32>
    %47 = arith.mulf %44, %46 : vector<8x256xf32>
    %c24 = arith.constant 24 : index
    %c0_26 = arith.constant 0 : index
    %48 = vector.load %arg16[%c24, %c0_26] : memref<72x256xf32, #tpu.memory_space<vmem>>, vector<8x256xf32>
    tpu.vector_store %arg16[%c24, %c0_26], %47 {strides = array<i32>} : memref<72x256xf32, #tpu.memory_space<vmem>>, vector<8x256xf32>,
    %49 = vector.extract_strided_slice %15 {offsets = [4, 0], sizes = [1, 256], strides = [1, 1]} : vector<9x256xf32> to vector<1x256xf32>
    %50 = vector.broadcast %49 : vector<1x256xf32> to vector<8x256xf32>
    %51 = arith.mulf %28, %50 : vector<8x256xf32>
    %c32 = arith.constant 32 : index
    %c0_27 = arith.constant 0 : index
    %52 = vector.load %arg16[%c32, %c0_27] : memref<72x256xf32, #tpu.memory_space<vmem>>, vector<8x256xf32>
    tpu.vector_store %arg16[%c32, %c0_27], %51 {strides = array<i32>} : memref<72x256xf32, #tpu.memory_space<vmem>>, vector<8x256xf32>,
    %c255_i32 = arith.constant 255 : i32
    %53 = tpu.dynamic_rotate %28 by %c255_i32 dim 1 : vector<8x256xf32>, i32 -> vector<8x256xf32>
    %54 = vector.extract_strided_slice %15 {offsets = [5, 0], sizes = [1, 256], strides = [1, 1]} : vector<9x256xf32> to vector<1x256xf32>
    %55 = vector.broadcast %54 : vector<1x256xf32> to vector<8x256xf32>
    %56 = arith.mulf %53, %55 : vector<8x256xf32>
    %c40 = arith.constant 40 : index
    %c0_28 = arith.constant 0 : index
    %57 = vector.load %arg16[%c40, %c0_28] : memref<72x256xf32, #tpu.memory_space<vmem>>, vector<8x256xf32>
    tpu.vector_store %arg16[%c40, %c0_28], %56 {strides = array<i32>} : memref<72x256xf32, #tpu.memory_space<vmem>>, vector<8x256xf32>,
    %c241_i32 = arith.constant 241 : i32
    %58 = tpu.dynamic_rotate %28 by %c241_i32 dim 1 : vector<8x256xf32>, i32 -> vector<8x256xf32>
    %59 = vector.extract_strided_slice %15 {offsets = [6, 0], sizes = [1, 256], strides = [1, 1]} : vector<9x256xf32> to vector<1x256xf32>
    %60 = vector.broadcast %59 : vector<1x256xf32> to vector<8x256xf32>
    %61 = arith.mulf %58, %60 : vector<8x256xf32>
    %c48 = arith.constant 48 : index
    %c0_29 = arith.constant 0 : index
    %62 = vector.load %arg16[%c48, %c0_29] : memref<72x256xf32, #tpu.memory_space<vmem>>, vector<8x256xf32>
    tpu.vector_store %arg16[%c48, %c0_29], %61 {strides = array<i32>} : memref<72x256xf32, #tpu.memory_space<vmem>>, vector<8x256xf32>,
    %c240_i32 = arith.constant 240 : i32
    %63 = tpu.dynamic_rotate %28 by %c240_i32 dim 1 : vector<8x256xf32>, i32 -> vector<8x256xf32>
    %64 = vector.extract_strided_slice %15 {offsets = [7, 0], sizes = [1, 256], strides = [1, 1]} : vector<9x256xf32> to vector<1x256xf32>
    %65 = vector.broadcast %64 : vector<1x256xf32> to vector<8x256xf32>
    %66 = arith.mulf %63, %65 : vector<8x256xf32>
    %c56 = arith.constant 56 : index
    %c0_30 = arith.constant 0 : index
    %67 = vector.load %arg16[%c56, %c0_30] : memref<72x256xf32, #tpu.memory_space<vmem>>, vector<8x256xf32>
    tpu.vector_store %arg16[%c56, %c0_30], %66 {strides = array<i32>} : memref<72x256xf32, #tpu.memory_space<vmem>>, vector<8x256xf32>,
    %c239_i32 = arith.constant 239 : i32
    %68 = tpu.dynamic_rotate %28 by %c239_i32 dim 1 : vector<8x256xf32>, i32 -> vector<8x256xf32>
    %69 = vector.extract_strided_slice %15 {offsets = [8, 0], sizes = [1, 256], strides = [1, 1]} : vector<9x256xf32> to vector<1x256xf32>
    %70 = vector.broadcast %69 : vector<1x256xf32> to vector<8x256xf32>
    %71 = arith.mulf %68, %70 : vector<8x256xf32>
    %c64 = arith.constant 64 : index
    %c0_31 = arith.constant 0 : index
    %72 = vector.load %arg16[%c64, %c0_31] : memref<72x256xf32, #tpu.memory_space<vmem>>, vector<8x256xf32>
    tpu.vector_store %arg16[%c64, %c0_31], %71 {strides = array<i32>} : memref<72x256xf32, #tpu.memory_space<vmem>>, vector<8x256xf32>,
    %c0_32 = arith.constant 0 : index
    %c0_33 = arith.constant 0 : index
    %73 = vector.load %arg16[%c0_32, %c0_33] : memref<72x256xf32, #tpu.memory_space<vmem>>, vector<72x256xf32>
    %cst_34 = arith.constant dense<0.000000e+00> : vector<8x256xf32>
    %74 = tpu.matmul %17, %73, %cst_34 {dimension_numbers = #tpu.dot_dimension_numbers<[1], [0], [0], [1], [0, 0, 1, 1], [], []>} : vector<8x72xf32>, vector<72x256xf32>, vector<8x256xf32> -> vector<8x256xf32>
    %75 = vector.broadcast %3 : vector<8x1xf32> to vector<8x256xf32>
    %76 = arith.addf %74, %75 : vector<8x256xf32>
    %cst_35 = arith.constant 0.000000e+00 : f32
    %77 = vector.broadcast %cst_35 : f32 to vector<8x256xf32>
    %78 = arith.maximumf %76, %77 : vector<8x256xf32>
    %79 = vector.broadcast %4 : vector<8x1xf32> to vector<8x256xf32>
    %80 = arith.mulf %12, %79 : vector<8x256xf32>
    %81 = vector.broadcast %5 : vector<8x1xf32> to vector<8x256xf32>
    %82 = arith.addf %80, %81 : vector<8x256xf32>
    %cst_36 = arith.constant 0.000000e+00 : f32
    %83 = vector.broadcast %cst_36 : f32 to vector<8x256xf32>
    %84 = arith.maximumf %82, %83 : vector<8x256xf32>
    %85 = arith.addf %78, %84 : vector<8x256xf32>
    %cst_37 = arith.constant 0.000000e+00 : f32
    %86 = vector.broadcast %cst_37 : f32 to vector<8x256xf32>
    %87 = arith.maximumf %85, %86 : vector<8x256xf32>
    %cst_38 = arith.constant dense<0.000000e+00> : vector<8x256xf32>
    %88 = tpu.matmul %19, %28, %cst_38 {dimension_numbers = #tpu.dot_dimension_numbers<[1], [0], [0], [1], [0, 0, 1, 1], [], []>} : vector<8x8xf32>, vector<8x256xf32>, vector<8x256xf32> -> vector<8x256xf32>
    %89 = tpu.concatenate %87, %88 in 0 : vector<8x256xf32>, vector<8x256xf32> -> vector<16x256xf32>
    %90 = arith.truncf %89 : vector<16x256xf32> to vector<16x256xbf16>
    %cst_39 = arith.constant dense<0.000000e+00> : vector<16x1024xf32>
    %91 = tpu.matmul %90, %14, %cst_39 {dimension_numbers = #tpu.dot_dimension_numbers<[1], [0], [0], [1], [0, 0, 1, 1], [], []>} : vector<16x256xbf16>, vector<256x1024xbf16>, vector<16x1024xf32> -> vector<16x1024xf32>
    %92 = vector.extract_strided_slice %91 {offsets = [0, 0], sizes = [8, 1024], strides = [1, 1]} : vector<16x1024xf32> to vector<8x1024xf32>
    %93 = vector.extract_strided_slice %91 {offsets = [8, 0], sizes = [4, 1024], strides = [1, 1]} : vector<16x1024xf32> to vector<4x1024xf32>
    %94 = vector.broadcast %9 : vector<4x1xf32> to vector<4x1024xf32>
    %95 = arith.addf %93, %94 : vector<4x1024xf32>
    %c33_i32 = arith.constant 33 : i32
    %96 = tpu.dynamic_rotate %92 by %c33_i32 dim 1 : vector<8x1024xf32>, i32 -> vector<8x1024xf32>
    %97 = vector.extract_strided_slice %16 {offsets = [0, 0], sizes = [1, 1024], strides = [1, 1]} : vector<9x1024xf32> to vector<1x1024xf32>
    %98 = vector.broadcast %97 : vector<1x1024xf32> to vector<8x1024xf32>
    %99 = arith.mulf %96, %98 : vector<8x1024xf32>
    %c0_40 = arith.constant 0 : index
    %c0_41 = arith.constant 0 : index
    %100 = vector.load %arg17[%c0_40, %c0_41] : memref<72x1024xf32, #tpu.memory_space<vmem>>, vector<8x1024xf32>
    tpu.vector_store %arg17[%c0_40, %c0_41], %99 {strides = array<i32>} : memref<72x1024xf32, #tpu.memory_space<vmem>>, vector<8x1024xf32>,
    %c32_i32 = arith.constant 32 : i32
    %101 = tpu.dynamic_rotate %92 by %c32_i32 dim 1 : vector<8x1024xf32>, i32 -> vector<8x1024xf32>
    %102 = vector.extract_strided_slice %16 {offsets = [1, 0], sizes = [1, 1024], strides = [1, 1]} : vector<9x1024xf32> to vector<1x1024xf32>
    %103 = vector.broadcast %102 : vector<1x1024xf32> to vector<8x1024xf32>
    %104 = arith.mulf %101, %103 : vector<8x1024xf32>
    %c8_42 = arith.constant 8 : index
    %c0_43 = arith.constant 0 : index
    %105 = vector.load %arg17[%c8_42, %c0_43] : memref<72x1024xf32, #tpu.memory_space<vmem>>, vector<8x1024xf32>
    tpu.vector_store %arg17[%c8_42, %c0_43], %104 {strides = array<i32>} : memref<72x1024xf32, #tpu.memory_space<vmem>>, vector<8x1024xf32>,
    %c31_i32 = arith.constant 31 : i32
    %106 = tpu.dynamic_rotate %92 by %c31_i32 dim 1 : vector<8x1024xf32>, i32 -> vector<8x1024xf32>
    %107 = vector.extract_strided_slice %16 {offsets = [2, 0], sizes = [1, 1024], strides = [1, 1]} : vector<9x1024xf32> to vector<1x1024xf32>
    %108 = vector.broadcast %107 : vector<1x1024xf32> to vector<8x1024xf32>
    %109 = arith.mulf %106, %108 : vector<8x1024xf32>
    %c16_44 = arith.constant 16 : index
    %c0_45 = arith.constant 0 : index
    %110 = vector.load %arg17[%c16_44, %c0_45] : memref<72x1024xf32, #tpu.memory_space<vmem>>, vector<8x1024xf32>
    tpu.vector_store %arg17[%c16_44, %c0_45], %109 {strides = array<i32>} : memref<72x1024xf32, #tpu.memory_space<vmem>>, vector<8x1024xf32>,
    %c1_i32_46 = arith.constant 1 : i32
    %111 = tpu.dynamic_rotate %92 by %c1_i32_46 dim 1 : vector<8x1024xf32>, i32 -> vector<8x1024xf32>
    %112 = vector.extract_strided_slice %16 {offsets = [3, 0], sizes = [1, 1024], strides = [1, 1]} : vector<9x1024xf32> to vector<1x1024xf32>
    %113 = vector.broadcast %112 : vector<1x1024xf32> to vector<8x1024xf32>
    %114 = arith.mulf %111, %113 : vector<8x1024xf32>
    %c24_47 = arith.constant 24 : index
    %c0_48 = arith.constant 0 : index
    %115 = vector.load %arg17[%c24_47, %c0_48] : memref<72x1024xf32, #tpu.memory_space<vmem>>, vector<8x1024xf32>
    tpu.vector_store %arg17[%c24_47, %c0_48], %114 {strides = array<i32>} : memref<72x1024xf32, #tpu.memory_space<vmem>>, vector<8x1024xf32>,
    %116 = vector.extract_strided_slice %16 {offsets = [4, 0], sizes = [1, 1024], strides = [1, 1]} : vector<9x1024xf32> to vector<1x1024xf32>
    %117 = vector.broadcast %116 : vector<1x1024xf32> to vector<8x1024xf32>
    %118 = arith.mulf %92, %117 : vector<8x1024xf32>
    %c32_49 = arith.constant 32 : index
    %c0_50 = arith.constant 0 : index
    %119 = vector.load %arg17[%c32_49, %c0_50] : memref<72x1024xf32, #tpu.memory_space<vmem>>, vector<8x1024xf32>
    tpu.vector_store %arg17[%c32_49, %c0_50], %118 {strides = array<i32>} : memref<72x1024xf32, #tpu.memory_space<vmem>>, vector<8x1024xf32>,
    %c1023_i32 = arith.constant 1023 : i32
    %120 = tpu.dynamic_rotate %92 by %c1023_i32 dim 1 : vector<8x1024xf32>, i32 -> vector<8x1024xf32>
    %121 = vector.extract_strided_slice %16 {offsets = [5, 0], sizes = [1, 1024], strides = [1, 1]} : vector<9x1024xf32> to vector<1x1024xf32>
    %122 = vector.broadcast %121 : vector<1x1024xf32> to vector<8x1024xf32>
    %123 = arith.mulf %120, %122 : vector<8x1024xf32>
    %c40_51 = arith.constant 40 : index
    %c0_52 = arith.constant 0 : index
    %124 = vector.load %arg17[%c40_51, %c0_52] : memref<72x1024xf32, #tpu.memory_space<vmem>>, vector<8x1024xf32>
    tpu.vector_store %arg17[%c40_51, %c0_52], %123 {strides = array<i32>} : memref<72x1024xf32, #tpu.memory_space<vmem>>, vector<8x1024xf32>,
    %c993_i32 = arith.constant 993 : i32
    %125 = tpu.dynamic_rotate %92 by %c993_i32 dim 1 : vector<8x1024xf32>, i32 -> vector<8x1024xf32>
    %126 = vector.extract_strided_slice %16 {offsets = [6, 0], sizes = [1, 1024], strides = [1, 1]} : vector<9x1024xf32> to vector<1x1024xf32>
    %127 = vector.broadcast %126 : vector<1x1024xf32> to vector<8x1024xf32>
    %128 = arith.mulf %125, %127 : vector<8x1024xf32>
    %c48_53 = arith.constant 48 : index
    %c0_54 = arith.constant 0 : index
    %129 = vector.load %arg17[%c48_53, %c0_54] : memref<72x1024xf32, #tpu.memory_space<vmem>>, vector<8x1024xf32>
    tpu.vector_store %arg17[%c48_53, %c0_54], %128 {strides = array<i32>} : memref<72x1024xf32, #tpu.memory_space<vmem>>, vector<8x1024xf32>,
    %c992_i32 = arith.constant 992 : i32
    %130 = tpu.dynamic_rotate %92 by %c992_i32 dim 1 : vector<8x1024xf32>, i32 -> vector<8x1024xf32>
    %131 = vector.extract_strided_slice %16 {offsets = [7, 0], sizes = [1, 1024], strides = [1, 1]} : vector<9x1024xf32> to vector<1x1024xf32>
    %132 = vector.broadcast %131 : vector<1x1024xf32> to vector<8x1024xf32>
    %133 = arith.mulf %130, %132 : vector<8x1024xf32>
    %c56_55 = arith.constant 56 : index
    %c0_56 = arith.constant 0 : index
    %134 = vector.load %arg17[%c56_55, %c0_56] : memref<72x1024xf32, #tpu.memory_space<vmem>>, vector<8x1024xf32>
    tpu.vector_store %arg17[%c56_55, %c0_56], %133 {strides = array<i32>} : memref<72x1024xf32, #tpu.memory_space<vmem>>, vector<8x1024xf32>,
    %c991_i32 = arith.constant 991 : i32
    %135 = tpu.dynamic_rotate %92 by %c991_i32 dim 1 : vector<8x1024xf32>, i32 -> vector<8x1024xf32>
    %136 = vector.extract_strided_slice %16 {offsets = [8, 0], sizes = [1, 1024], strides = [1, 1]} : vector<9x1024xf32> to vector<1x1024xf32>
    %137 = vector.broadcast %136 : vector<1x1024xf32> to vector<8x1024xf32>
    %138 = arith.mulf %135, %137 : vector<8x1024xf32>
    %c64_57 = arith.constant 64 : index
    %c0_58 = arith.constant 0 : index
    %139 = vector.load %arg17[%c64_57, %c0_58] : memref<72x1024xf32, #tpu.memory_space<vmem>>, vector<8x1024xf32>
    tpu.vector_store %arg17[%c64_57, %c0_58], %138 {strides = array<i32>} : memref<72x1024xf32, #tpu.memory_space<vmem>>, vector<8x1024xf32>,
    %c0_59 = arith.constant 0 : index
    %c0_60 = arith.constant 0 : index
    %140 = vector.load %arg17[%c0_59, %c0_60] : memref<72x1024xf32, #tpu.memory_space<vmem>>, vector<72x1024xf32>
    %cst_61 = arith.constant dense<0.000000e+00> : vector<4x1024xf32>
    %141 = tpu.matmul %18, %140, %cst_61 {dimension_numbers = #tpu.dot_dimension_numbers<[1], [0], [0], [1], [0, 0, 1, 1], [], []>} : vector<4x72xf32>, vector<72x1024xf32>, vector<4x1024xf32> -> vector<4x1024xf32>
    %142 = vector.broadcast %6 : vector<4x1xf32> to vector<4x1024xf32>
    %143 = arith.addf %141, %142 : vector<4x1024xf32>
    %144 = vector.broadcast %7 : vector<4x1xf32> to vector<4x1024xf32>
    %145 = arith.mulf %13, %144 : vector<4x1024xf32>
    %146 = vector.broadcast %8 : vector<4x1xf32> to vector<4x1024xf32>
    %147 = arith.addf %145, %146 : vector<4x1024xf32>
    %cst_62 = arith.constant 0.000000e+00 : f32
    %148 = vector.broadcast %cst_62 : f32 to vector<4x1024xf32>
    %149 = arith.maximumf %147, %148 : vector<4x1024xf32>
    %150 = arith.addf %143, %149 : vector<4x1024xf32>
    %cst_63 = arith.constant 0.000000e+00 : f32
    %151 = vector.broadcast %cst_63 : f32 to vector<4x1024xf32>
    %152 = arith.maximumf %150, %151 : vector<4x1024xf32>
    %153 = arith.addf %152, %95 : vector<4x1024xf32>
    %cst_64 = arith.constant 0.000000e+00 : f32
    %154 = vector.broadcast %cst_64 : f32 to vector<4x1024xf32>
    %155 = arith.maximumf %153, %154 : vector<4x1024xf32>
    %c0_65 = arith.constant 0 : index
    %c0_66 = arith.constant 0 : index
    %156 = vector.load %arg12[%c0_65, %c0_66] : memref<4x1024xf32, #tpu.memory_space<vmem>>, vector<4x1024xf32>
    tpu.vector_store %arg12[%c0_65, %c0_66], %155 {strides = array<i32>} : memref<4x1024xf32, #tpu.memory_space<vmem>>, vector<4x1024xf32>,
    %c0_67 = arith.constant 0 : index
    %c0_68 = arith.constant 0 : index
    %157 = vector.load %arg13[%c0_67, %c0_68] : memref<8x256xf32, #tpu.memory_space<vmem>>, vector<8x256xf32>
    tpu.vector_store %arg13[%c0_67, %c0_68], %28 {strides = array<i32>} : memref<8x256xf32, #tpu.memory_space<vmem>>, vector<8x256xf32>,
    %c0_69 = arith.constant 0 : index
    %c0_70 = arith.constant 0 : index
    %158 = vector.load %arg14[%c0_69, %c0_70] : memref<8x256xf32, #tpu.memory_space<vmem>>, vector<8x256xf32>
    tpu.vector_store %arg14[%c0_69, %c0_70], %87 {strides = array<i32>} : memref<8x256xf32, #tpu.memory_space<vmem>>, vector<8x256xf32>,
    %c0_71 = arith.constant 0 : index
    %c0_72 = arith.constant 0 : index
    %159 = vector.load %arg15[%c0_71, %c0_72] : memref<4x1024xf32, #tpu.memory_space<vmem>>, vector<4x1024xf32>
    tpu.vector_store %arg15[%c0_71, %c0_72], %152 {strides = array<i32>} : memref<4x1024xf32, #tpu.memory_space<vmem>>, vector<4x1024xf32>,
    return
  }
  func.func @transform_0(%arg0: i32) -> (i32, i32) {
    %c0_i32 = arith.constant 0 : i32
    %c0_i32_0 = arith.constant 0 : i32
    return %c0_i32, %arg0 : i32, i32
  }
  func.func @transform_1(%arg0: i32) -> (i32, i32) {
    %c0_i32 = arith.constant 0 : i32
    %c0_i32_0 = arith.constant 0 : i32
    return %c0_i32, %arg0 : i32, i32
  }
  func.func @transform_2(%arg0: i32) -> (i32, i32) {
    %c0_i32 = arith.constant 0 : i32
    %c0_i32_0 = arith.constant 0 : i32
    return %c0_i32, %arg0 : i32, i32
  }
  func.func @transform_3(%arg0: i32) -> (i32, i32) {
    %c0_i32 = arith.constant 0 : i32
    %c0_i32_0 = arith.constant 0 : i32
    return %c0_i32, %arg0 : i32, i32
  }
  func.func @transform_4(%arg0: i32) -> (i32, i32) {
    %c0_i32 = arith.constant 0 : i32
    %c0_i32_0 = arith.constant 0 : i32
    %c0_i32_1 = arith.constant 0 : i32
    return %c0_i32, %c0_i32_0 : i32, i32
  }
  func.func @transform_5(%arg0: i32) -> (i32, i32) {
    %c0_i32 = arith.constant 0 : i32
    %c0_i32_0 = arith.constant 0 : i32
    %c0_i32_1 = arith.constant 0 : i32
    return %c0_i32, %c0_i32_0 : i32, i32
  }
  func.func @transform_6(%arg0: i32) -> (i32, i32) {
    %c0_i32 = arith.constant 0 : i32
    %c0_i32_0 = arith.constant 0 : i32
    %c0_i32_1 = arith.constant 0 : i32
    return %c0_i32, %c0_i32_0 : i32, i32
  }
  func.func @transform_7(%arg0: i32) -> (i32, i32) {
    %c0_i32 = arith.constant 0 : i32
    %c0_i32_0 = arith.constant 0 : i32
    %c0_i32_1 = arith.constant 0 : i32
    return %c0_i32, %c0_i32_0 : i32, i32
  }
  func.func @transform_8(%arg0: i32) -> (i32, i32) {
    %c0_i32 = arith.constant 0 : i32
    %c0_i32_0 = arith.constant 0 : i32
    %c0_i32_1 = arith.constant 0 : i32
    return %c0_i32, %c0_i32_0 : i32, i32
  }
  func.func @transform_9(%arg0: i32) -> (i32, i32) {
    %c0_i32 = arith.constant 0 : i32
    %c0_i32_0 = arith.constant 0 : i32
    %c0_i32_1 = arith.constant 0 : i32
    return %c0_i32, %c0_i32_0 : i32, i32
  }
  func.func @transform_10(%arg0: i32) -> (i32, i32) {
    %c0_i32 = arith.constant 0 : i32
    %c0_i32_0 = arith.constant 0 : i32
    %c0_i32_1 = arith.constant 0 : i32
    return %c0_i32, %c0_i32_0 : i32, i32
  }
  func.func @transform_11(%arg0: i32) -> (i32, i32) {
    %c0_i32 = arith.constant 0 : i32
    %c0_i32_0 = arith.constant 0 : i32
    return %c0_i32, %arg0 : i32, i32
  }
  func.func @transform_12(%arg0: i32) -> (i32, i32) {
    %c0_i32 = arith.constant 0 : i32
    %c0_i32_0 = arith.constant 0 : i32
    return %c0_i32, %arg0 : i32, i32
  }
  func.func @transform_13(%arg0: i32) -> (i32, i32) {
    %c0_i32 = arith.constant 0 : i32
    %c0_i32_0 = arith.constant 0 : i32
    return %c0_i32, %arg0 : i32, i32
  }
  func.func @transform_14(%arg0: i32) -> (i32, i32) {
    %c0_i32 = arith.constant 0 : i32
    %c0_i32_0 = arith.constant 0 : i32
    return %c0_i32, %arg0 : i32, i32
  }
}

</mosaic_0001>

<bundles_post_ra>
// kernel: basic_block_td_forward.1
= control target key start
LH: loop header
LB: loop body
LE: loop exit
PB: predicated region body
PF: predicated region fallthrough
CT: control target
= control target key end

     0   :  { %s3561_s29 = smov 0   ;;  %s4900_s0 = inlined_call_operand.vmem [shape: f32[8,512], index: 0, kind: input, shape index: {}]   ;;  %s4901_s1 = inlined_call_operand.vmem [shape: f32[8,512], index: 1, kind: input, shape index: {}]   ;;  %s4902_s2 = inlined_call_operand.vmem [shape: f32[8,512], index: 2, kind: input, shape index: {}]   ;;  %s4903_s3 = inlined_call_operand.vmem [shape: f32[4,2048], index: 3, kind: input, shape index: {}]   ;;  %s4904_s4 = inlined_call_operand.vmem [shape: bf16[256,1024], index: 4, kind: input, shape index: {}]   ;;  %s4905_s5 = inlined_call_operand.vmem [shape: f32[9,256], index: 5, kind: input, shape index: {}]   ;;  %s4906_s6 = inlined_call_operand.vmem [shape: f32[9,1024], index: 6, kind: input, shape index: {}]   ;;  %s4907_s7 = inlined_call_operand.vmem [shape: f32[8,72], index: 7, kind: input, shape index: {}]   ;;  %s4908_s8 = inlined_call_operand.vmem [shape: f32[4,72], index: 8, kind: input, shape index: {}]   ;;  %s4909_s9 = inlined_call_operand.vmem [shape: f32[8,8], index: 9, kind: input, shape index: {}]   ;;  %s4910_s10 = inlined_call_operand.vmem [shape: f32[72,1], index: 10, kind: input, shape index: {}]   ;;  %s4911_s11 = inlined_call_operand.vmem [shape: f32[4,2048], index: 11, kind: output, shape index: {0}]   ;;  %s4912_s12 = inlined_call_operand.vmem [shape: f32[8,512], index: 12, kind: output, shape index: {1}]   ;;  %s4913_s13 = inlined_call_operand.vmem [shape: f32[8,512], index: 13, kind: output, shape index: {2}]   ;;  %s4914_s14 = inlined_call_operand.vmem [shape: f32[4,2048], index: 14, kind: output, shape index: {3}]  }
   0x1 LB: > { %s3267_s30 = sadd.s32 4294967295, %s3467_s29   ;;  %p3271_p0 = scmp.ge.s32.totalorder %s3467_s29, 1  ;;  %s3467_s29 = sphi %s3561_s29, %s25_s29  }
   0x2   : > { %p453_p1 = scmp.lt.s32.totalorder %s3467_s29, 3 }
   0x4   : > { %p454_p2 = pnand %p3271_p0, %p453_p1 }
   0x6   : > { %457 = sbr.rel (%p454_p2) target bundleno = 1154 (0x482), region = 64 }
   0xb   : > { %v577_v0 = vld [vmem:[%s4910_s10] sm:$0xff]  ;;  %v3469_v1 = vmov 0   ;;  %v578_v2 = vld [vmem:[%s4910_s10 + $0x8] sm:$0xff]  ;;  %s3272_s19 = sshll.u32 %s3267_s30, 1  ;;  %s3470_s16 = smov 112   ;;  %v4915_v19 = vmov 0.0  }
   0xc   : > { %3459 = vset.pattern.permute.xlu0 %v3469_v1  ;;  %3460 = vset.pattern.permute.xlu1 %v3469_v1  ;;  %p530_p3 = scmp.lt.s32.totalorder %s3272_s19, 3  ;;  %s3471_s17 = smov 111   ;;  %v580_v20 = vld [vmem:[%s4910_s10 + $0x18] sm:$0xff]  ;;  %v581_v21 = vld [vmem:[%s4910_s10 + $0x20] sm:$0xff]  ;;  %vm1053_vm0 = vcmask 64512   ;;  %v579_v32 = vld [vmem:[%s4910_s10 + $0x10] sm:$0xff] }
   0xd   : > { %749 = vperm.xlu0 %3459, %v577_v0   ;;  %s3472_s18 = smov 113   ;;  %s3474_s21 = smov 1   ;;  %1024 = vmatprep.mubr.f32.mxu0 %v4915_v19  ;;  %v746_v22 = vld [vmem:[%s4909_s9] sm:$0xff]  ;;  %vm956_vm9 = vcmask 588800  }
   0xe   : > { %s4927_s19 = smov (!%p530_p3, %s3272_s19), 3  ;;  %s3475_s22 = smov 15   ;;  %1121 = vmatprep.mubr.f32.mxu1 %v4915_v19  ;;  %v652_v23 = vld [vmem:[%s4904_s4 + $0x1c0] sm:$0xff] }
   0xf   : > { %s3577_s20 = sshll.u32 %s4927_s19, 3  ;;  %s3473_s19 = smov 127   ;;  %v656_v24 = vld [vmem:[%s4904_s4 + $0x1e0] sm:$0xff] }
  0x10   : > { %s539_s23 = scalar_lea.vmem %s4901_s1, %s3577_s20  ;;  %s533_s26 = scalar_lea.vmem %s4900_s0, %s3577_s20  ;;  %v3348_v25 = vcombine.low %v652_v23, %v656_v24  ;;  %v3349_v26 = vcombine.high %v652_v23, %v656_v24  ;;  %v644_v27 = vld [vmem:[%s4904_s4 + $0x180] sm:$0xff]  ;;  %v3288_v23 = vld [vmem:[%s4905_s5 + $0x10] ss:$0 sm:$0xff] }
  0x11   : > { %756 = vperm.xlu0 %3459, %v578_v2   ;;  %v588_v4 = vld [vmem:[%s539_s23] sm:$0xff]  ;;  %v589_v5 = vld [vmem:[%s539_s23 + $0x8] sm:$0xff]  ;;  %s563_s15 = scalar_lea.vmem %s4912_s12, %s3577_s20  ;;  %s3476_s23 = smov 16  }
  0x12   : > { %v586_v11 = vld [vmem:[%s533_s26] sm:$0xff]  ;;  %v587_v12 = vld [vmem:[%s533_s26 + $0x8] sm:$0xff]  ;;  %s3477_s24 = smov 17   ;;  %s545_s28 = scalar_lea.vmem %s4902_s2, %s3577_s20 }
  0x13   : > { %v648_v28 = vld [vmem:[%s4904_s4 + $0x1a0] sm:$0xff]  ;;  %s3480_s25 = smov 96   ;;  %s3484_s26 = smov 32  }
  0x14   : > { %v3341_v29 = vcombine.high %v644_v27, %v648_v28  ;;  %v636_v30 = vld [vmem:[%s4904_s4 + $0x140] sm:$0xff]  ;;  %v3340_v33 = vcombine.low %v644_v27, %v648_v28  ;;  %v3733_v28 = vld [vmem:[%s4905_s5 + $0x8] sm:$0xff] }
  0x15   : > { %v640_v31 = vld [vmem:[%s4904_s4 + $0x160] sm:$0xff] }
  0x16   : > { %v3333_v34 = vcombine.high %v636_v30, %v640_v31  ;;  %v628_v35 = vld [vmem:[%s4904_s4 + $0x100] sm:$0xff]  ;;  %v3332_v37 = vcombine.low %v636_v30, %v640_v31 }
  0x17   : > { %v632_v36 = vld [vmem:[%s4904_s4 + $0x120] sm:$0xff] }
  0x18   : > { %v3325_v38 = vcombine.high %v628_v35, %v632_v36  ;;  %v620_v39 = vld [vmem:[%s4904_s4 + $0xc0] sm:$0xff]  ;;  %v3324_v41 = vcombine.low %v628_v35, %v632_v36 }
  0x19   : > { %v624_v40 = vld [vmem:[%s4904_s4 + $0xe0] sm:$0xff] }
  0x1a   : > { %v3317_v42 = vcombine.high %v620_v39, %v624_v40  ;;  %v612_v43 = vld [vmem:[%s4904_s4 + $0x80] sm:$0xff]  ;;  %v3316_v45 = vcombine.low %v620_v39, %v624_v40 }
  0x1b   : > { %v616_v44 = vld [vmem:[%s4904_s4 + $0xa0] sm:$0xff] }
  0x1c   : > { %v3309_v46 = vcombine.high %v612_v43, %v616_v44  ;;  %v604_v47 = vld [vmem:[%s4904_s4 + $0x40] sm:$0xff]  ;;  %v3308_v49 = vcombine.low %v612_v43, %v616_v44 }
  0x1d   : > { %v608_v48 = vld [vmem:[%s4904_s4 + $0x60] sm:$0xff] }
  0x1e   : > { %v3301_v50 = vcombine.high %v604_v47, %v608_v48  ;;  %v596_v51 = vld [vmem:[%s4904_s4] sm:$0xff]  ;;  %v3300_v53 = vcombine.low %v604_v47, %v608_v48 }
  0x1f   : > { %v600_v52 = vld [vmem:[%s4904_s4 + $0x20] sm:$0xff] }
  0x20   : > { %v3293_v54 = vcombine.high %v596_v51, %v600_v52  ;;  %v716_v55 = vld [vmem:[%s4904_s4 + $0x3c0] sm:$0xff]  ;;  %v3292_v57 = vcombine.low %v596_v51, %v600_v52 }
  0x21   : > { %v720_v56 = vld [vmem:[%s4904_s4 + $0x3e0] sm:$0xff] }
  0x22   : > { %v3413_v58 = vcombine.high %v716_v55, %v720_v56  ;;  %v708_v59 = vld [vmem:[%s4904_s4 + $0x380] sm:$0xff]  ;;  %v3412_v61 = vcombine.low %v716_v55, %v720_v56 }
  0x23   : > { %v712_v60 = vld [vmem:[%s4904_s4 + $0x3a0] sm:$0xff] }
  0x24   : > { %v3405_v62 = vcombine.high %v708_v59, %v712_v60  ;;  %v700_v63 = vld [vmem:[%s4904_s4 + $0x340] sm:$0xff]  ;;  %v3404_v1 = vcombine.low %v708_v59, %v712_v60 }
  0x25   : > { %v704_v0 = vld [vmem:[%s4904_s4 + $0x360] sm:$0xff] }
  0x26   : > { %v3397_v2 = vcombine.high %v700_v63, %v704_v0  ;;  %v3728_v27 = vld [vmem:[%s4905_s5] sm:$0xff] }
  0x88   : > { %v750_v3 = vpop.permute.xlu0 %749 }
  0x89   : > { %v752_v6 = vmul.f32 %v750_v3, %v588_v4  ;;  %v753_v7 = vmul.f32 %v750_v3, %v589_v5  ;;  %v692_v3 = vld [vmem:[%s4904_s4 + $0x300] sm:$0xff]  ;;  %v3396_v5 = vcombine.low %v700_v63, %v704_v0 }
  0x8a   : > { %v696_v4 = vld [vmem:[%s4904_s4 + $0x320] sm:$0xff] }
  0x8c   : > { %v757_v8 = vpop.permute.xlu0 %756 }
  0x8d   : > { %v759_v9 = vadd.f32 %v757_v8, %v752_v6  ;;  %v760_v10 = vadd.f32 %v757_v8, %v753_v7  ;;  %v3389_v6 = vcombine.high %v692_v3, %v696_v4  ;;  %v684_v7 = vld [vmem:[%s4904_s4 + $0x2c0] sm:$0xff] }
  0x8e   : > { %v688_v8 = vld [vmem:[%s4904_s4 + $0x2e0] sm:$0xff] }
  0x8f   : > { %v761_v13 = vmax.f32 %v759_v9, 0.0  ;;  %v762_v14 = vmax.f32 %v760_v10, 0.0  ;;  %v3388_v9 = vcombine.low %v692_v3, %v696_v4  ;;  %v3381_v10 = vcombine.high %v684_v7, %v688_v8 }
  0x91   : > { %v763_v15 = vadd.f32 %v761_v13, %v586_v11  ;;  %v764_v16 = vadd.f32 %v762_v14, %v587_v12  ;;  %v3380_v11 = vcombine.low %v684_v7, %v688_v8  ;;  %v771_v12 = vlaneseq }
  0x93   : > { %v3591_v17 = vmax.f32 %v763_v15, 0.0  ;;  %v3593_v18 = vmax.f32 %v764_v16, 0.0  ;;  %v3711_v13 = vand.u32 127, %v771_v12  ;;  %v3713_v16 = vshrl.u32 %v771_v12, 7 }
  0x95   : > { %3049 = vst [vmem:[%s563_s15] sm:$0xff] %v3591_v17  ;;  %1087 = vmatprep.subr.mxu1 %v3593_v18  ;;  %895 = vrot.lane.b32.xlu0 %v3591_v17, %s3470_s16  ;;  %3050 = vst [vmem:[%s563_s15 + $0x8] sm:$0xff] %v3593_v18  ;;  %vm918_vm1 = vcmp.lt.s32.totalorder %v3711_v13, 111  ;;  %vm899_vm2 = vcmp.lt.s32.totalorder %v3711_v13, 112  ;;  %vm880_vm3 = vcmp.lt.s32.totalorder %v3711_v13, 113  ;;  %v3752_v44 = vsub.s32 4, %v3713_v16 }
  0x96   : > { %914 = vrot.lane.b32.xlu1 %v3591_v17, %s3471_s17  ;;  %1088 = vmatpush1.msra.mxu1 %v3591_v17  ;;  %vm861_vm4 = vcmp.lt.s32.totalorder %v3711_v13, 127  ;;  %v3756_v47 = vsub.s32 3, %v3713_v16  ;;  %vm830_vm5 = vcmp.lt.s32.totalorder %v3711_v13, 1  ;;  %vm811_vm6 = vcmp.lt.s32.totalorder %v3711_v13, 15 }
  0x97   : > { %3291 = vmatmul.mubr.msk.f32.vlgmr.msra.gmra.mxu1 %vm1053_vm0, %v746_v22  ;;  %1770 = vmatprep.subr.bf16.mxu1 %v3349_v26  ;;  %v3289_v22 = vld [vmem:[%s4905_s5 + $0x18] ss:$0 sm:$0xff]  ;;  %v848_v55 = vrot.slane %v3728_v27, %v3752_v44  ;;  %vm792_vm7 = vcmp.lt.s32.totalorder %v3711_v13, 16  ;;  %vm773_vm8 = vcmp.lt.s32.totalorder %v3711_v13, 17  ;;  %vm2455_vm10 = vcmp.lt.s32.totalorder %v3711_v13, 96 }
  0x98   : > { %1771 = vmatpush1.bf16.msra.mxu1 %v3348_v25  ;;  %vm2528_vm11 = vcmp.lt.s32.totalorder %v3711_v13, 95  ;;  %vm2382_vm12 = vcmp.lt.s32.totalorder %v3711_v13, 97  ;;  %vm2117_vm13 = vcmp.lt.s32.totalorder %v3711_v13, 31  ;;  %vm2044_vm14 = vcmp.lt.s32.totalorder %v3711_v13, 32 }
  0x99   : > { %876 = vrot.lane.b32.xlu0 %v3591_v17, %s3472_s18  ;;  %1772 = vmatprep.subr.bf16.mxu1 %v3341_v29  ;;  %v3737_v29 = vsub.s32 6, %v3713_v16  ;;  %vm1971_vm15 = vcmp.lt.s32.totalorder %v3711_v13, 33  ;;  %v3485_v13 = vmov 839922192  }
  0x9a   : > { %916 = vrot.lane.b32.xlu1 %v3593_v18, %s3471_s17  ;;  %s569_s17 = scalar_lea.vmem %s4913_s13, %s3577_s20 }
  0x9c   : > { %1773 = vmatpush1.bf16.msra.mxu1 %v3340_v33 }
  0x9d   : > { %857 = vrot.lane.b32.xlu0 %v3591_v17, %s3473_s19  ;;  %1774 = vmatprep.subr.bf16.mxu1 %v3333_v34 }
  0x9e   : > { %897 = vrot.lane.b32.xlu1 %v3593_v18, %s3470_s16 }
  0xa0   : > { %1775 = vmatpush1.bf16.msra.mxu1 %v3332_v37 }
  0xa1   : > { %826 = vrot.lane.b32.xlu0 %v3591_v17, %s3474_s21  ;;  %1776 = vmatprep.subr.bf16.mxu1 %v3325_v38  ;;  %v886_v38 = vrot.slane %v3728_v27, %v3737_v29 }
  0xa2   : > { %878 = vrot.lane.b32.xlu1 %v3593_v18, %s3472_s18 }
  0xa4   : > { %1777 = vmatpush1.bf16.msra.mxu1 %v3324_v41  ;;  %v890_v41 = vrot.slane %v3733_v28, %v3737_v29 }
  0xa5   : > { %807 = vrot.lane.b32.xlu0 %v3591_v17, %s3475_s22  ;;  %1778 = vmatprep.subr.bf16.mxu1 %v3317_v42  ;;  %v3749_v42 = vsub.s32 5, %v3713_v16 }
  0xa6   : > { %859 = vrot.lane.b32.xlu1 %v3593_v18, %s3473_s19 }
  0xa7   : > { %v867_v51 = vrot.slane %v3728_v27, %v3749_v42  ;;  %v871_v52 = vrot.slane %v3733_v28, %v3749_v42 }
  0xa8   : > { %1779 = vmatpush1.bf16.msra.mxu1 %v3316_v45 }
  0xa9   : > { %788 = vrot.lane.b32.xlu0 %v3591_v17, %s3476_s23  ;;  %1780 = vmatprep.subr.bf16.mxu1 %v3309_v46 }
  0xaa   : > { %828 = vrot.lane.b32.xlu1 %v3593_v18, %s3474_s21 }
  0xac   : > { %1781 = vmatpush1.bf16.msra.mxu1 %v3308_v49 }
  0xad   : > { %767 = vrot.lane.b32.xlu0 %v3591_v17, %s3477_s24  ;;  %1782 = vmatprep.subr.bf16.mxu1 %v3301_v50 }
  0xae   : > { %809 = vrot.lane.b32.xlu1 %v3593_v18, %s3475_s22  ;;  %s3479_s22 = smov 95  }
  0xb0   : > { %1783 = vmatpush1.bf16.msra.mxu1 %v3300_v53 }
  0xb1   : > { %1035 = vperm.xlu0 %3459, %v580_v20   ;;  %1784 = vmatprep.subr.bf16.mxu1 %v3293_v54  ;;  %v3717_v20 = vsub.s32 7, %v3713_v16  ;;  %v852_v54 = vrot.slane %v3733_v28, %v3752_v44 }
  0xb2   : > { %790 = vrot.lane.b32.xlu1 %v3593_v18, %s3476_s23  ;;  %s3483_s23 = smov 33  }
  0xb3   : > { %v905_v31 = vrot.slane %v3728_v27, %v3717_v20 }
  0xb4   : > { %1785 = vmatpush1.bf16.msra.mxu1 %v3292_v57 }
  0xb5   : > { %1042 = vperm.xlu0 %3459, %v581_v21   ;;  %1786 = vmatprep.subr.bf16.mxu1 %v3413_v58  ;;  %v836_v58 = vrot.slane %v3728_v27, %v3756_v47 }
  0xb6   : > { %769 = vrot.lane.b32.xlu1 %v3593_v18, %s3477_s24  ;;  %s3481_s24 = smov 97  }
  0xb8   : > { %1787 = vmatpush2.bf16.msra.mxu1 %v3412_v61  ;;  %v840_v61 = vrot.slane %v3733_v28, %v3756_v47 }
  0xb9   : > { %1788 = vmatprep.subr.bf16.mxu1 %v3405_v62  ;;  %v3776_v62 = vsub.s32 2, %v3713_v16 }
  0xba   : > { %953 = vperm.xlu1 %3460, %v579_v32   ;;  %v909_v32 = vrot.slane %v3733_v28, %v3717_v20 }
  0xbc   : > { %1789 = vmatpush2.bf16.msra.mxu1 %v3404_v1  ;;  %v854_v1 = vmul.f32 %v852_v54, %v3593_v18  ;;  %v817_v18 = vrot.slane %v3728_v27, %v3776_v62 }
  0xbd   : > { %1790 = vmatprep.subr.bf16.mxu1 %v3397_v2  ;;  %v853_v2 = vmul.f32 %v848_v55, %v3591_v17  ;;  %v821_v17 = vrot.slane %v3733_v28, %v3776_v62 }
  0xc0   : > { %1791 = vmatpush2.bf16.msra.mxu1 %v3396_v5  ;;  %v3786_v5 = vsub.s32 1, %v3713_v16 }
  0xc1   : > { %1792 = vmatprep.subr.bf16.mxu1 %v3389_v6 }
  0xc4   : > { %1793 = vmatpush2.bf16.msra.mxu1 %v3388_v9 }
  0xc5   : > { %1794 = vmatprep.subr.bf16.mxu1 %v3381_v10 }
  0xc8   : > { %1795 = vmatpush2.bf16.msra.mxu1 %v3380_v11  ;;  %v798_v11 = vrot.slane %v3728_v27, %v3786_v5 }
 0x107   : > { %v896_v14 = vpop.permute.xlu0 %895 }
 0x108   : > { %v915_v15 = vpop.permute.xlu1 %914 }
 0x10b   : > { %v877_v21 = vpop.permute.xlu0 %876 }
 0x10c   : > { %v917_v24 = vpop.permute.xlu1 %916 }
 0x10d   : > { %v919_v25 = vsel %vm918_vm1, %v915_v15, %v917_v24  ;;  %v920_v26 = vsel %vm918_vm1, %v917_v24, %v915_v15 }
 0x10e   : > { %v930_v30 = vmul.f32 %v3289_v22, %v920_v26  ;;  %v929_v33 = vmul.f32 %v3288_v23, %v919_v25  ;;  %v3798_v22 = vsub.s32 0, %v3713_v16 }
 0x10f   : > { %v858_v34 = vpop.permute.xlu0 %857 }
 0x110   : > { %974 = vmatprep.subr.mxu0 %v930_v30  ;;  %v898_v35 = vpop.permute.xlu1 %897 }
 0x111   : > { %v900_v36 = vsel %vm899_vm2, %v896_v14, %v898_v35  ;;  %v901_v37 = vsel %vm899_vm2, %v898_v35, %v896_v14  ;;  %975 = vmatpush1.msra.mxu0 %v929_v33  ;;  %v653_v33 = vld [vmem:[%s4904_s4 + $0x1c8] sm:$0xff] }
 0x112   : > { %v910_v39 = vmul.f32 %v905_v31, %v900_v36  ;;  %v911_v40 = vmul.f32 %v909_v32, %v901_v37  ;;  %v779_v31 = vrot.slane %v3728_v27, %v3798_v22  ;;  %v783_v32 = vrot.slane %v3733_v28, %v3798_v22  ;;  %v645_v27 = vld [vmem:[%s4904_s4 + $0x188] sm:$0xff] }
 0x113   : > { %v827_v48 = vpop.permute.xlu0 %826 }
 0x114   : > { %976 = vmatprep.subr.mxu0 %v911_v40  ;;  %v879_v43 = vpop.permute.xlu1 %878 }
 0x115   : > { %v881_v45 = vsel %vm880_vm3, %v877_v21, %v879_v43  ;;  %v882_v46 = vsel %vm880_vm3, %v879_v43, %v877_v21  ;;  %977 = vmatpush1.msra.mxu0 %v910_v39  ;;  %v802_v21 = vrot.slane %v3733_v28, %v3786_v5  ;;  %v649_v28 = vld [vmem:[%s4904_s4 + $0x1a8] sm:$0xff]  ;;  %v744_v43 = vld [vmem:[%s4907_s7] sm:$0xff] }
 0x116   : > { %v891_v49 = vmul.f32 %v886_v38, %v881_v45  ;;  %v892_v50 = vmul.f32 %v890_v41, %v882_v46  ;;  %v3343_v46 = vcombine.high %v645_v27, %v649_v28 }
 0x117   : > { %v808_v63 = vpop.permute.xlu0 %807 }
 0x118   : > { %978 = vmatprep.subr.mxu0 %v892_v50  ;;  %v860_v53 = vpop.permute.xlu1 %859  ;;  %v3342_v50 = vcombine.low %v645_v27, %v649_v28  ;;  %v676_v27 = vld [vmem:[%s4904_s4 + $0x280] sm:$0xff] }
 0x119   : > { %v862_v56 = vsel %vm861_vm4, %v858_v34, %v860_v53  ;;  %v863_v57 = vsel %vm861_vm4, %v860_v53, %v858_v34  ;;  %979 = vmatpush1.msra.mxu0 %v891_v49  ;;  %v657_v34 = vld [vmem:[%s4904_s4 + $0x1e8] sm:$0xff]  ;;  %v680_v28 = vld [vmem:[%s4904_s4 + $0x2a0] sm:$0xff] }
 0x11a   : > { %v872_v59 = vmul.f32 %v867_v51, %v862_v56  ;;  %v873_v60 = vmul.f32 %v871_v52, %v863_v57  ;;  %v3351_v41 = vcombine.high %v653_v33, %v657_v34  ;;  %v3350_v45 = vcombine.low %v653_v33, %v657_v34  ;;  %v641_v49 = vld [vmem:[%s4904_s4 + $0x168] sm:$0xff] }
 0x11b   : > { %v789_v12 = vpop.permute.xlu0 %788  ;;  %v629_v52 = vld [vmem:[%s4904_s4 + $0x108] sm:$0xff] }
 0x11c   : > { %980 = vmatprep.subr.mxu0 %v873_v60  ;;  %v829_v0 = vpop.permute.xlu1 %828  ;;  %v633_v53 = vld [vmem:[%s4904_s4 + $0x128] sm:$0xff] }
 0x11d   : > { %v831_v3 = vsel %vm830_vm5, %v827_v48, %v829_v0  ;;  %v832_v4 = vsel %vm830_vm5, %v829_v0, %v827_v48  ;;  %981 = vmatpush1.msra.mxu0 %v872_v59  ;;  %v637_v48 = vld [vmem:[%s4904_s4 + $0x148] sm:$0xff]  ;;  %v3327_v55 = vcombine.high %v629_v52, %v633_v53 }
 0x11e   : > { %v841_v6 = vmul.f32 %v836_v58, %v832_v4  ;;  %v842_v7 = vmul.f32 %v840_v61, %v831_v3  ;;  %982 = vmatprep.subr.mxu0 %v854_v1  ;;  %v3335_v51 = vcombine.high %v637_v48, %v641_v49  ;;  %v3334_v54 = vcombine.low %v637_v48, %v641_v49  ;;  %v621_v56 = vld [vmem:[%s4904_s4 + $0xc8] sm:$0xff]  ;;  %v668_v48 = vld [vmem:[%s4904_s4 + $0x240] sm:$0xff] }
 0x11f   : > { %983 = vmatpush1.msra.mxu0 %v853_v2  ;;  %v768_v35 = vpop.permute.xlu0 %767  ;;  %v625_v57 = vld [vmem:[%s4904_s4 + $0xe8] sm:$0xff]  ;;  %v3326_v58 = vcombine.low %v629_v52, %v633_v53  ;;  %v672_v49 = vld [vmem:[%s4904_s4 + $0x260] sm:$0xff] }
 0x120   : > { %v810_v8 = vpop.permute.xlu1 %809  ;;  %984 = vmatprep.subr.mxu0 %v842_v7  ;;  %v3319_v59 = vcombine.high %v621_v56, %v625_v57  ;;  %v613_v60 = vld [vmem:[%s4904_s4 + $0x88] sm:$0xff]  ;;  %v3364_v53 = vcombine.low %v668_v48, %v672_v49 }
 0x121   : > { %v812_v9 = vsel %vm811_vm6, %v808_v63, %v810_v8  ;;  %v813_v10 = vsel %vm811_vm6, %v810_v8, %v808_v63  ;;  %985 = vmatpush1.msra.mxu0 %v841_v6  ;;  %v617_v61 = vld [vmem:[%s4904_s4 + $0xa8] sm:$0xff]  ;;  %v3318_v63 = vcombine.low %v621_v56, %v625_v57  ;;  %v660_v56 = vld [vmem:[%s4904_s4 + $0x200] sm:$0xff] }
 0x122   : > { %v822_v14 = vmul.f32 %v817_v18, %v813_v10  ;;  %v823_v15 = vmul.f32 %v821_v17, %v812_v9  ;;  %v3311_v0 = vcombine.high %v613_v60, %v617_v61  ;;  %v605_v1 = vld [vmem:[%s4904_s4 + $0x48] sm:$0xff]  ;;  %v3310_v3 = vcombine.low %v613_v60, %v617_v61  ;;  %v664_v57 = vld [vmem:[%s4904_s4 + $0x220] sm:$0xff] }
 0x123   : > { %v609_v2 = vld [vmem:[%s4904_s4 + $0x68] sm:$0xff]  ;;  %v3356_v61 = vcombine.low %v660_v56, %v664_v57 }
 0x124   : > { %v791_v23 = vpop.permute.xlu1 %790  ;;  %986 = vmatprep.subr.mxu0 %v823_v15  ;;  %v3303_v4 = vcombine.high %v605_v1, %v609_v2  ;;  %v597_v6 = vld [vmem:[%s4904_s4 + $0x8] sm:$0xff]  ;;  %v3302_v18 = vcombine.low %v605_v1, %v609_v2  ;;  %v654_v1 = vld [vmem:[%s4904_s4 + $0x1d0] sm:$0xff] }
 0x125   : > { %v793_v24 = vsel %vm792_vm7, %v789_v12, %v791_v23  ;;  %v794_v25 = vsel %vm792_vm7, %v791_v23, %v789_v12  ;;  %987 = vmatpush1.msra.mxu0 %v822_v14  ;;  %v601_v7 = vld [vmem:[%s4904_s4 + $0x28] sm:$0xff]  ;;  %v658_v2 = vld [vmem:[%s4904_s4 + $0x1f0] sm:$0xff] }
 0x126   : > { %v803_v26 = vmul.f32 %v798_v11, %v794_v25  ;;  %v804_v30 = vmul.f32 %v802_v21, %v793_v24  ;;  %v3295_v17 = vcombine.high %v597_v6, %v601_v7  ;;  %v717_v8 = vld [vmem:[%s4904_s4 + $0x3c8] sm:$0xff]  ;;  %v3294_v10 = vcombine.low %v597_v6, %v601_v7  ;;  %v659_v6 = vld [vmem:[%s4904_s4 + $0x1f8] sm:$0xff] }
 0x127   : > { %v721_v9 = vld [vmem:[%s4904_s4 + $0x3e8] sm:$0xff]  ;;  %v3352_v7 = vcombine.low %v654_v1, %v658_v2 }
 0x128   : > { %v770_v36 = vpop.permute.xlu1 %769  ;;  %988 = vmatprep.subr.mxu0 %v804_v30  ;;  %v3415_v11 = vcombine.high %v717_v8, %v721_v9  ;;  %v709_v12 = vld [vmem:[%s4904_s4 + $0x388] sm:$0xff]  ;;  %v3414_v15 = vcombine.low %v717_v8, %v721_v9  ;;  %v590_v9 = vld [vmem:[%s545_s28] sm:$0xff] }
 0x129   : > { %v774_v37 = vsel %vm773_vm8, %v768_v35, %v770_v36  ;;  %v775_v38 = vsel %vm773_vm8, %v770_v36, %v768_v35  ;;  %989 = vmatpush1.msra.mxu0 %v803_v26  ;;  %v713_v14 = vld [vmem:[%s4904_s4 + $0x3a8] sm:$0xff] }
 0x12a   : > { %v784_v39 = vmul.f32 %v779_v31, %v775_v38  ;;  %v785_v40 = vmul.f32 %v783_v32, %v774_v37  ;;  %v3407_v21 = vcombine.high %v709_v12, %v713_v14  ;;  %v701_v23 = vld [vmem:[%s4904_s4 + $0x348] sm:$0xff]  ;;  %v3406_v25 = vcombine.low %v709_v12, %v713_v14 }
 0x12b   : > { %v705_v24 = vld [vmem:[%s4904_s4 + $0x368] sm:$0xff] }
 0x12c   : > { %990 = vmatprep.subr.mxu0 %v785_v40  ;;  %v3399_v26 = vcombine.high %v701_v23, %v705_v24  ;;  %v693_v30 = vld [vmem:[%s4904_s4 + $0x308] sm:$0xff]  ;;  %v3398_v32 = vcombine.low %v701_v23, %v705_v24  ;;  %v3373_v40 = vcombine.high %v676_v27, %v680_v28  ;;  %v1036_v8 = vpop.permute.xlu0 %1035 }
 0x12d   : > { %991 = vmatpush1.msra.mxu0 %v784_v39  ;;  %v697_v31 = vld [vmem:[%s4904_s4 + $0x328] sm:$0xff]  ;;  %v1038_v12 = vmul.f32 %v1036_v8, %v590_v9 }
 0x12e   : > { %3290 = vmatmul.mubr.msk.f32.vlgmr.msra.gmra.mxu0 %vm956_vm9, %v744_v43  ;;  %1813 = vmatprep.subr.bf16.mxu0 %v3351_v41  ;;  %v3391_v33 = vcombine.high %v693_v30, %v697_v31  ;;  %v685_v34 = vld [vmem:[%s4904_s4 + $0x2c8] sm:$0xff]  ;;  %v3390_v36 = vcombine.low %v693_v30, %v697_v31  ;;  %v3372_v43 = vcombine.low %v676_v27, %v680_v28  ;;  %v646_v28 = vld [vmem:[%s4904_s4 + $0x190] sm:$0xff] }
 0x12f   : > { %1814 = vmatpush1.bf16.msra.mxu0 %v3350_v45  ;;  %v689_v35 = vld [vmem:[%s4904_s4 + $0x2e8] sm:$0xff]  ;;  %1796 = vmatprep.subr.bf16.mxu1 %v3373_v40  ;;  %v650_v40 = vld [vmem:[%s4904_s4 + $0x1b0] sm:$0xff] }
 0x130   : > { %1815 = vmatprep.subr.bf16.mxu0 %v3343_v46  ;;  %v3383_v37 = vcombine.high %v685_v34, %v689_v35  ;;  %v3382_v38 = vcombine.low %v685_v34, %v689_v35  ;;  %v677_v39 = vld [vmem:[%s4904_s4 + $0x288] sm:$0xff]  ;;  %1797 = vmatpush2.bf16.msra.mxu1 %v3372_v43  ;;  %v651_v43 = vld [vmem:[%s4904_s4 + $0x1b8] sm:$0xff] }
 0x131   : > { %v681_v41 = vld [vmem:[%s4904_s4 + $0x2a8] sm:$0xff] }
 0x132   : > { %v3374_v45 = vcombine.low %v677_v39, %v681_v41  ;;  %v3375_v46 = vcombine.high %v677_v39, %v681_v41  ;;  %v673_v52 = vld [vmem:[%s4904_s4 + $0x268] sm:$0xff]  ;;  %v647_v41 = vld [vmem:[%s4904_s4 + $0x198] sm:$0xff] }
 0x133   : > { %1816 = vmatpush1.bf16.msra.mxu0 %v3342_v50  ;;  %v669_v50 = vld [vmem:[%s4904_s4 + $0x248] sm:$0xff] }
 0x134   : > { %1817 = vmatprep.subr.bf16.mxu0 %v3335_v51  ;;  %v3365_v51 = vcombine.high %v668_v48, %v672_v49  ;;  %v665_v60 = vld [vmem:[%s4904_s4 + $0x228] sm:$0xff]  ;;  %v638_v48 = vld [vmem:[%s4904_s4 + $0x150] sm:$0xff]  ;;  %v3345_v49 = vcombine.high %v646_v28, %v650_v40 }
 0x135   : > { %v954_v14 = vpop.permute.xlu1 %953 }
 0x136   : > { %1798 = vmatprep.subr.bf16.mxu1 %v3365_v51  ;;  %v642_v51 = vld [vmem:[%s4904_s4 + $0x170] sm:$0xff] }
 0x137   : > { %1818 = vmatpush1.bf16.msra.mxu0 %v3334_v54  ;;  %v3366_v54 = vcombine.low %v669_v50, %v673_v52  ;;  %1799 = vmatpush2.bf16.msra.mxu1 %v3364_v53  ;;  %v643_v53 = vld [vmem:[%s4904_s4 + $0x178] sm:$0xff] }
 0x138   : > { %1819 = vmatprep.subr.bf16.mxu0 %v3327_v55  ;;  %v3367_v55 = vcombine.high %v669_v50, %v673_v52  ;;  %v3347_v50 = vcombine.high %v647_v41, %v651_v43  ;;  %v639_v52 = vld [vmem:[%s4904_s4 + $0x158] sm:$0xff] }
 0x13b   : > { %1820 = vmatpush1.bf16.msra.mxu0 %v3326_v58  ;;  %v661_v58 = vld [vmem:[%s4904_s4 + $0x208] sm:$0xff] }
 0x13c   : > { %1821 = vmatprep.subr.bf16.mxu0 %v3319_v59  ;;  %v3357_v59 = vcombine.high %v660_v56, %v664_v57  ;;  %v3337_v56 = vcombine.high %v638_v48, %v642_v51  ;;  %v3339_v57 = vcombine.high %v639_v52, %v643_v53 }
 0x13e   : > { %1800 = vmatprep.subr.bf16.mxu1 %v3357_v59  ;;  %v634_v59 = vld [vmem:[%s4904_s4 + $0x130] sm:$0xff] }
 0x13f   : > { %1822 = vmatpush1.bf16.msra.mxu0 %v3318_v63  ;;  %v3358_v63 = vcombine.low %v661_v58, %v665_v60  ;;  %1801 = vmatpush2.bf16.msra.mxu1 %v3356_v61  ;;  %v635_v61 = vld [vmem:[%s4904_s4 + $0x138] sm:$0xff] }
 0x140   : > { %1823 = vmatprep.subr.bf16.mxu0 %v3311_v0  ;;  %v3359_v0 = vcombine.high %v661_v58, %v665_v60  ;;  %v630_v58 = vld [vmem:[%s4904_s4 + $0x110] sm:$0xff]  ;;  %v631_v60 = vld [vmem:[%s4904_s4 + $0x118] sm:$0xff] }
 0x143   : > { %1824 = vmatpush1.bf16.msra.mxu0 %v3310_v3  ;;  %v655_v3 = vld [vmem:[%s4904_s4 + $0x1d8] sm:$0xff] }
 0x144   : > { %1825 = vmatprep.subr.bf16.mxu0 %v3303_v4  ;;  %v3353_v4 = vcombine.high %v654_v1, %v658_v2  ;;  %v3329_v1 = vcombine.high %v630_v58, %v634_v59  ;;  %v3331_v2 = vcombine.high %v631_v60, %v635_v61 }
 0x146   : > { %1856 = vmatprep.subr.bf16.mxu1 %v3353_v4  ;;  %v626_v4 = vld [vmem:[%s4904_s4 + $0xf0] sm:$0xff] }
 0x147   : > { %1826 = vmatpush1.bf16.msra.mxu0 %v3302_v18  ;;  %v3354_v18 = vcombine.low %v655_v3, %v659_v6 }
 0x148   : > { %1827 = vmatprep.subr.bf16.mxu0 %v3295_v17  ;;  %v3355_v17 = vcombine.high %v655_v3, %v659_v6  ;;  %v622_v3 = vld [vmem:[%s4904_s4 + $0xd0] sm:$0xff]  ;;  %v623_v6 = vld [vmem:[%s4904_s4 + $0xd8] sm:$0xff] }
 0x14b   : > { %1828 = vmatpush1.bf16.msra.mxu0 %v3294_v10  ;;  %v591_v10 = vld [vmem:[%s545_s28 + $0x8] sm:$0xff] }
 0x14c   : > { %1829 = vmatprep.subr.bf16.mxu0 %v3415_v11  ;;  %v1043_v11 = vpop.permute.xlu0 %1042 }
 0x14f   : > { %1830 = vmatpush2.bf16.msra.mxu0 %v3414_v15  ;;  %v1039_v15 = vmul.f32 %v1036_v8, %v591_v10  ;;  %v3321_v8 = vcombine.high %v622_v3, %v626_v4  ;;  %v614_v10 = vld [vmem:[%s4904_s4 + $0x90] sm:$0xff] }
 0x150   : > { %1831 = vmatprep.subr.bf16.mxu0 %v3407_v21  ;;  %v1045_v21 = vadd.f32 %v1043_v11, %v1038_v12  ;;  %v615_v12 = vld [vmem:[%s4904_s4 + $0x98] sm:$0xff] }
 0x151   : > { %v1046_v24 = vadd.f32 %v1043_v11, %v1039_v15  ;;  %v618_v11 = vld [vmem:[%s4904_s4 + $0xb0] sm:$0xff]  ;;  %v3320_v15 = vcombine.low %v622_v3, %v626_v4 }
 0x152   : > { %v1047_v30 = vmax.f32 %v1045_v21, 0.0 }
 0x153   : > { %1832 = vmatpush2.bf16.msra.mxu0 %v3406_v25 }
 0x154   : > { %1833 = vmatprep.subr.bf16.mxu0 %v3399_v26 }
 0x157   : > { %1834 = vmatpush2.bf16.msra.mxu0 %v3398_v32 }
 0x158   : > { %1835 = vmatprep.subr.bf16.mxu0 %v3391_v33  ;;  %v1048_v33 = vmax.f32 %v1046_v24, 0.0 }
 0x15b   : > { %1836 = vmatpush2.bf16.msra.mxu0 %v3390_v36  ;;  %v1123_v36 = vpop.f32.mrf.mxu1 }
 0x15c   : > { %1837 = vmatprep.subr.bf16.mxu0 %v3383_v37 }
 0x15d   : > { %v1125_v39 = vpop.f32.mrf.mxu1 }
 0x15f   : > { %1838 = vmatpush2.bf16.msra.mxu0 %v3382_v38 }
 0x160   : > { %1839 = vmatprep.subr.bf16.mxu0 %v3375_v46 }
 0x163   : > { %1840 = vmatpush2.bf16.msra.mxu0 %v3374_v45 }
 0x164   : > { %1841 = vmatprep.subr.bf16.mxu0 %v3367_v55  ;;  %v3346_v55 = vcombine.low %v647_v41, %v651_v43  ;;  %v718_v43 = vld [vmem:[%s4904_s4 + $0x3d0] sm:$0xff] }
 0x167   : > { %1842 = vmatpush2.bf16.msra.mxu0 %v3366_v54  ;;  %v3344_v54 = vcombine.low %v646_v28, %v650_v40 }
 0x168   : > { %1843 = vmatprep.subr.bf16.mxu0 %v3359_v0  ;;  %v3338_v0 = vcombine.low %v639_v52, %v643_v53 }
 0x16b   : > { %1844 = vmatpush2.bf16.msra.mxu0 %v3358_v63  ;;  %v3336_v63 = vcombine.low %v638_v48, %v642_v51  ;;  %v719_v48 = vld [vmem:[%s4904_s4 + $0x3d8] sm:$0xff] }
 0x16c   : > { %1899 = vmatprep.subr.bf16.mxu0 %v3355_v17  ;;  %v3330_v17 = vcombine.low %v631_v60, %v635_v61 }
 0x1ee   : > { %v1026_v23 = vpop.f32.mrf.mxu0 }
 0x1ef   : > { %v1027_v25 = vadd.f32 %v1026_v23, %v954_v14  ;;  %v3313_v23 = vcombine.high %v614_v10, %v618_v11 }
 0x1f0   : > { %v1028_v26 = vpop.f32.mrf.mxu0 }
 0x1f1   : > { %v1031_v31 = vmax.f32 %v1027_v25, 0.0  ;;  %v1029_v32 = vadd.f32 %v1028_v26, %v954_v14  ;;  %v619_v14 = vld [vmem:[%s4904_s4 + $0xb8] sm:$0xff]  ;;  %v606_v25 = vld [vmem:[%s4904_s4 + $0x50] sm:$0xff] }
 0x1f2   : > { %v3315_v24 = vcombine.high %v615_v12, %v619_v14  ;;  %v610_v26 = vld [vmem:[%s4904_s4 + $0x70] sm:$0xff] }
 0x1f3   : > { %v1032_v34 = vmax.f32 %v1029_v32, 0.0  ;;  %v1049_v35 = vadd.f32 %v1047_v30, %v1031_v31  ;;  %v607_v30 = vld [vmem:[%s4904_s4 + $0x58] sm:$0xff]  ;;  %v3312_v32 = vcombine.low %v614_v10, %v618_v11  ;;  %v3304_v28 = vcombine.low %v606_v25, %v610_v26 }
 0x1f4   : > { %v611_v31 = vld [vmem:[%s4904_s4 + $0x78] sm:$0xff] }
 0x1f5   : > { %v1051_v37 = vmax.f32 %v1049_v35, 0.0  ;;  %v1050_v38 = vadd.f32 %v1048_v33, %v1032_v34  ;;  %v3314_v33 = vcombine.low %v615_v12, %v619_v14  ;;  %v3305_v34 = vcombine.high %v606_v25, %v610_v26 }
 0x1f6   : > { %v3307_v35 = vcombine.high %v607_v30, %v611_v31 }
 0x1f7   : > { %3051 = vst [vmem:[%s569_s17] sm:$0xff] %v1051_v37  ;;  %v1052_v27 = vmax.f32 %v1050_v38, 0.0  ;;  %v3955_v46 = vpack.c.bf16 %v1123_v36, %v1051_v37  ;;  %v598_v36 = vld [vmem:[%s4904_s4 + $0x10] sm:$0xff]  ;;  %v599_v38 = vld [vmem:[%s4904_s4 + $0x18] sm:$0xff] }
 0x1f8   : > { %v602_v37 = vld [vmem:[%s4904_s4 + $0x30] sm:$0xff] }
 0x1f9   : > { %v1129_v45 = vpack.c.bf16 %v1125_v39, %v1052_v27  ;;  %3052 = vst [vmem:[%s569_s17 + $0x8] sm:$0xff] %v1052_v27  ;;  %v603_v27 = vld [vmem:[%s4904_s4 + $0x38] sm:$0xff]  ;;  %v3306_v39 = vcombine.low %v607_v30, %v611_v31  ;;  %v3297_v40 = vcombine.high %v598_v36, %v602_v37  ;;  %s3482_s17 = smov 31  }
 0x1fa   : > { %v3299_v41 = vcombine.high %v599_v38, %v603_v27  ;;  %v3298_v51 = vcombine.low %v599_v38, %v603_v27 }
 0x1fb   : > { %1802 = vmatprep.mubr.bf16.mxu1 %v1129_v45  ;;  %1845 = vmatprep.mubr.bf16.mxu0 %v1129_v45 }
 0x1fc   : > { %1803 = vmatmul.mubr.bf16.vlgmr.msra.gmra.mxu1 %v3955_v46  ;;  %1846 = vmatmul.mubr.bf16.vlgmr.msra.gmra.mxu0 %v3955_v46 }
 0x1fd   : > { %1857 = vmatpush1.bf16.msra.mxu1 %v3352_v7  ;;  %1900 = vmatpush1.bf16.msra.mxu0 %v3354_v18  ;;  %v627_v7 = vld [vmem:[%s4904_s4 + $0xf8] sm:$0xff]  ;;  %v3328_v18 = vcombine.low %v630_v58, %v634_v59 }
 0x1fe   : > { %1888 = vmatprep.mubr.bf16.mxu1 %v1129_v45  ;;  %1931 = vmatprep.mubr.bf16.mxu0 %v1129_v45  ;;  %v3323_v9 = vcombine.high %v623_v6, %v627_v7  ;;  %v3322_v21 = vcombine.low %v623_v6, %v627_v7  ;;  %v722_v45 = vld [vmem:[%s4904_s4 + $0x3f0] sm:$0xff] }
 0x1ff   : > { %1858 = vmatprep.subr.bf16.mxu1 %v3345_v49  ;;  %1901 = vmatprep.subr.bf16.mxu0 %v3347_v50  ;;  %v723_v49 = vld [vmem:[%s4904_s4 + $0x3f8] sm:$0xff]  ;;  %v3296_v50 = vcombine.low %v598_v36, %v602_v37  ;;  %v3417_v52 = vcombine.high %v718_v43, %v722_v45  ;;  %v3416_v58 = vcombine.low %v718_v43, %v722_v45 }
 0x200   : > { %v3419_v53 = vcombine.high %v719_v48, %v723_v49  ;;  %v3418_v59 = vcombine.low %v719_v48, %v723_v49 }
 0x201   : > { %1859 = vmatpush1.bf16.msra.mxu1 %v3344_v54  ;;  %1902 = vmatpush1.bf16.msra.mxu0 %v3346_v55  ;;  %v710_v54 = vld [vmem:[%s4904_s4 + $0x390] sm:$0xff] }
 0x202   : > { %1860 = vmatprep.subr.bf16.mxu1 %v3337_v56  ;;  %1903 = vmatprep.subr.bf16.mxu0 %v3339_v57  ;;  %v714_v55 = vld [vmem:[%s4904_s4 + $0x3b0] sm:$0xff]  ;;  %v711_v56 = vld [vmem:[%s4904_s4 + $0x398] sm:$0xff] }
 0x203   : > { %v715_v57 = vld [vmem:[%s4904_s4 + $0x3b8] sm:$0xff]  ;;  %v3409_v60 = vcombine.high %v710_v54, %v714_v55  ;;  %v3408_v3 = vcombine.low %v710_v54, %v714_v55 }
 0x204   : > { %v3411_v61 = vcombine.high %v711_v56, %v715_v57  ;;  %v3410_v4 = vcombine.low %v711_v56, %v715_v57 }
 0x205   : > { %1861 = vmatpush1.bf16.msra.mxu1 %v3336_v63  ;;  %1904 = vmatpush1.bf16.msra.mxu0 %v3338_v0  ;;  %v702_v63 = vld [vmem:[%s4904_s4 + $0x350] sm:$0xff] }
 0x206   : > { %1862 = vmatprep.subr.bf16.mxu1 %v3329_v1  ;;  %1905 = vmatprep.subr.bf16.mxu0 %v3331_v2  ;;  %v706_v0 = vld [vmem:[%s4904_s4 + $0x370] sm:$0xff]  ;;  %v703_v1 = vld [vmem:[%s4904_s4 + $0x358] sm:$0xff] }
 0x207   : > { %v707_v2 = vld [vmem:[%s4904_s4 + $0x378] sm:$0xff]  ;;  %v3401_v6 = vcombine.high %v702_v63, %v706_v0  ;;  %v3400_v10 = vcombine.low %v702_v63, %v706_v0 }
 0x208   : > { %v3403_v7 = vcombine.high %v703_v1, %v707_v2  ;;  %v3402_v11 = vcombine.low %v703_v1, %v707_v2 }
 0x209   : > { %1863 = vmatpush1.bf16.msra.mxu1 %v3328_v18  ;;  %1906 = vmatpush1.bf16.msra.mxu0 %v3330_v17  ;;  %v694_v18 = vld [vmem:[%s4904_s4 + $0x310] sm:$0xff] }
 0x20a   : > { %1864 = vmatprep.subr.bf16.mxu1 %v3321_v8  ;;  %1907 = vmatprep.subr.bf16.mxu0 %v3323_v9  ;;  %v698_v17 = vld [vmem:[%s4904_s4 + $0x330] sm:$0xff]  ;;  %v695_v8 = vld [vmem:[%s4904_s4 + $0x318] sm:$0xff] }
 0x20b   : > { %v699_v9 = vld [vmem:[%s4904_s4 + $0x338] sm:$0xff]  ;;  %v3393_v12 = vcombine.high %v694_v18, %v698_v17  ;;  %v3392_v25 = vcombine.low %v694_v18, %v698_v17 }
 0x20c   : > { %v3395_v14 = vcombine.high %v695_v8, %v699_v9  ;;  %v3394_v26 = vcombine.low %v695_v8, %v699_v9 }
 0x20d   : > { %1865 = vmatpush1.bf16.msra.mxu1 %v3320_v15  ;;  %1908 = vmatpush1.bf16.msra.mxu0 %v3322_v21  ;;  %v686_v15 = vld [vmem:[%s4904_s4 + $0x2d0] sm:$0xff] }
 0x20e   : > { %1866 = vmatprep.subr.bf16.mxu1 %v3313_v23  ;;  %1909 = vmatprep.subr.bf16.mxu0 %v3315_v24  ;;  %v690_v21 = vld [vmem:[%s4904_s4 + $0x2f0] sm:$0xff]  ;;  %v687_v23 = vld [vmem:[%s4904_s4 + $0x2d8] sm:$0xff] }
 0x20f   : > { %v691_v24 = vld [vmem:[%s4904_s4 + $0x2f8] sm:$0xff]  ;;  %v3385_v30 = vcombine.high %v686_v15, %v690_v21  ;;  %v3384_v36 = vcombine.low %v686_v15, %v690_v21  ;;  %v583_v15 = vld [vmem:[%s4910_s10 + $0x30] sm:$0xff] }
 0x210   : > { %v3387_v31 = vcombine.high %v687_v23, %v691_v24  ;;  %v3386_v37 = vcombine.low %v687_v23, %v691_v24  ;;  %v585_v24 = vld [vmem:[%s4910_s10 + $0x40] sm:$0xff] }
 0x211   : > { %1867 = vmatpush1.bf16.msra.mxu1 %v3312_v32  ;;  %1910 = vmatpush1.bf16.msra.mxu0 %v3314_v33  ;;  %v678_v32 = vld [vmem:[%s4904_s4 + $0x290] sm:$0xff] }
 0x212   : > { %1868 = vmatprep.subr.bf16.mxu1 %v3305_v34  ;;  %1911 = vmatprep.subr.bf16.mxu0 %v3307_v35  ;;  %v682_v33 = vld [vmem:[%s4904_s4 + $0x2b0] sm:$0xff]  ;;  %v679_v34 = vld [vmem:[%s4904_s4 + $0x298] sm:$0xff] }
 0x213   : > { %v683_v35 = vld [vmem:[%s4904_s4 + $0x2b8] sm:$0xff]  ;;  %v3377_v38 = vcombine.high %v678_v32, %v682_v33  ;;  %v3376_v43 = vcombine.low %v678_v32, %v682_v33 }
 0x214   : > { %v3379_v27 = vcombine.high %v679_v34, %v683_v35  ;;  %v3378_v45 = vcombine.low %v679_v34, %v683_v35 }
 0x215   : > { %1869 = vmatpush1.bf16.msra.mxu1 %v3304_v28  ;;  %1912 = vmatpush1.bf16.msra.mxu0 %v3306_v39  ;;  %v670_v28 = vld [vmem:[%s4904_s4 + $0x250] sm:$0xff] }
 0x216   : > { %1870 = vmatprep.subr.bf16.mxu1 %v3297_v40  ;;  %1913 = vmatprep.subr.bf16.mxu0 %v3299_v41  ;;  %v674_v39 = vld [vmem:[%s4904_s4 + $0x270] sm:$0xff]  ;;  %v671_v40 = vld [vmem:[%s4904_s4 + $0x258] sm:$0xff] }
 0x217   : > { %v675_v41 = vld [vmem:[%s4904_s4 + $0x278] sm:$0xff]  ;;  %v3369_v48 = vcombine.high %v670_v28, %v674_v39  ;;  %v3368_v54 = vcombine.low %v670_v28, %v674_v39  ;;  %v4343_v28 = vld [vmem:[%s4906_s6] sm:$0xff] }
 0x218   : > { %v3371_v49 = vcombine.high %v671_v40, %v675_v41  ;;  %v3370_v55 = vcombine.low %v671_v40, %v675_v41 }
 0x219   : > { %1871 = vmatpush1.bf16.msra.mxu1 %v3296_v50  ;;  %1914 = vmatpush1.bf16.msra.mxu0 %v3298_v51  ;;  %v662_v50 = vld [vmem:[%s4904_s4 + $0x210] sm:$0xff] }
 0x21a   : > { %1872 = vmatprep.subr.bf16.mxu1 %v3417_v52  ;;  %1915 = vmatprep.subr.bf16.mxu0 %v3419_v53  ;;  %v666_v51 = vld [vmem:[%s4904_s4 + $0x230] sm:$0xff]  ;;  %v663_v52 = vld [vmem:[%s4904_s4 + $0x218] sm:$0xff] }
 0x21b   : > { %v667_v53 = vld [vmem:[%s4904_s4 + $0x238] sm:$0xff]  ;;  %v3361_v56 = vcombine.high %v662_v50, %v666_v51 }
 0x21c   : > { %v3363_v57 = vcombine.high %v663_v52, %v667_v53 }
 0x21d   : > { %1873 = vmatpush2.bf16.msra.mxu1 %v3416_v58  ;;  %1916 = vmatpush2.bf16.msra.mxu0 %v3418_v59  ;;  %v3360_v58 = vcombine.low %v662_v50, %v666_v51  ;;  %v3362_v59 = vcombine.low %v663_v52, %v667_v53 }
 0x21e   : > { %1874 = vmatprep.subr.bf16.mxu1 %v3409_v60  ;;  %1917 = vmatprep.subr.bf16.mxu0 %v3411_v61 }
 0x221   : > { %1875 = vmatpush2.bf16.msra.mxu1 %v3408_v3  ;;  %1918 = vmatpush2.bf16.msra.mxu0 %v3410_v4 }
 0x222   : > { %1876 = vmatprep.subr.bf16.mxu1 %v3401_v6  ;;  %1919 = vmatprep.subr.bf16.mxu0 %v3403_v7 }
 0x225   : > { %1877 = vmatpush2.bf16.msra.mxu1 %v3400_v10  ;;  %1920 = vmatpush2.bf16.msra.mxu0 %v3402_v11 }
 0x226   : > { %1878 = vmatprep.subr.bf16.mxu1 %v3393_v12  ;;  %1921 = vmatprep.subr.bf16.mxu0 %v3395_v14  ;;  %v584_v14 = vld [vmem:[%s4910_s10 + $0x38] sm:$0xff] }
 0x229   : > { %1879 = vmatpush2.bf16.msra.mxu1 %v3392_v25  ;;  %1922 = vmatpush2.bf16.msra.mxu0 %v3394_v26  ;;  %v582_v25 = vld [vmem:[%s4910_s10 + $0x28] sm:$0xff] }
 0x22a   : > { %1880 = vmatprep.subr.bf16.mxu1 %v3385_v30  ;;  %1923 = vmatprep.subr.bf16.mxu0 %v3387_v31 }
 0x22d   : > { %1881 = vmatpush2.bf16.msra.mxu1 %v3384_v36  ;;  %1924 = vmatpush2.bf16.msra.mxu0 %v3386_v37  ;;  %v4332_v37 = vld [vmem:[%s4906_s6 + $0x8] sm:$0xff] }
 0x22e   : > { %1882 = vmatprep.subr.bf16.mxu1 %v3377_v38  ;;  %1925 = vmatprep.subr.bf16.mxu0 %v3379_v27  ;;  %v3420_v38 = vld [vmem:[%s4906_s6 + $0x40] ss:$0 sm:$0xff]  ;;  %v3421_v27 = vld [vmem:[%s4906_s6 + $0x48] ss:$0 sm:$0xff]  ;;  %v2471_v39 = vrot.slane %v4332_v37, %v3717_v20 }
 0x231   : > { %1883 = vmatpush2.bf16.msra.mxu1 %v3376_v43  ;;  %1926 = vmatpush2.bf16.msra.mxu0 %v3378_v45  ;;  %v2467_v43 = vrot.slane %v4343_v28, %v3717_v20 }
 0x232   : > { %1884 = vmatprep.subr.bf16.mxu1 %v3369_v48  ;;  %1927 = vmatprep.subr.bf16.mxu0 %v3371_v49 }
 0x235   : > { %1885 = vmatpush2.bf16.msra.mxu1 %v3368_v54  ;;  %1928 = vmatpush2.bf16.msra.mxu0 %v3370_v55 }
 0x236   : > { %1886 = vmatprep.subr.bf16.mxu1 %v3361_v56  ;;  %1929 = vmatprep.subr.bf16.mxu0 %v3363_v57  ;;  %v2394_v57 = vrot.slane %v4343_v28, %v3737_v29 }
 0x239   : > { %1887 = vmatpush2.bf16.msra.mxu1 %v3360_v58  ;;  %1930 = vmatpush2.bf16.msra.mxu0 %v3362_v59  ;;  %v2398_v58 = vrot.slane %v4332_v37, %v3737_v29  ;;  %v2325_v59 = vrot.slane %v4332_v37, %v3749_v42 }
 0x23c   : > { %1889 = vmatmul.mubr.bf16.vlgmr.msra.gmra.mxu1 %v3955_v46  ;;  %1932 = vmatmul.mubr.bf16.vlgmr.msra.gmra.mxu0 %v3955_v46 }
 0x23d   : > { %2800 = vmatprep.mubr.f32.mxu0 %v4915_v19  ;;  %2729 = vmatprep.mubr.f32.mxu1 %v4915_v19 }
 0x2bc   : > { %v4131_v60 = vpop.f32.mrf.mxu1  ;;  %v4133_v61 = vpop.f32.mrf.mxu0 }
 0x2bd   : > { %2516 = vrot.lane.b32.xlu0 %v4133_v61, %s3479_s22  ;;  %2512 = vrot.lane.b32.xlu1 %v4131_v60, %s3479_s22 }
 0x2be   : > { %v4167_v46 = vpop.f32.mrf.mxu1  ;;  %v4173_v63 = vpop.f32.mrf.mxu0 }
 0x2c0   : > { %v4199_v0 = vpop.f32.mrf.mxu1  ;;  %v4213_v3 = vpop.f32.mrf.mxu0 }
 0x2c1   : > { %2439 = vrot.lane.b32.xlu0 %v4131_v60, %s3480_s25  ;;  %2443 = vrot.lane.b32.xlu1 %v4133_v61, %s3480_s25  ;;  %4917 = vst [vmem:[#allocation4_spill] sm:$0xff] %v4199_v0  ;;  %4919 = vst [vmem:[#allocation6_spill] sm:$0xff] %v4213_v3 }
 0x2c2   : > { %v4205_v1 = vpop.f32.mrf.mxu1  ;;  %v4219_v4 = vpop.f32.mrf.mxu0 }
 0x2c3   : > { %4918 = vst [vmem:[#allocation5_spill] sm:$0xff] %v4205_v1  ;;  %4920 = vst [vmem:[#allocation7_spill] sm:$0xff] %v4219_v4 }
 0x2c5   : > { %2370 = vrot.lane.b32.xlu0 %v4133_v61, %s3481_s24  ;;  %2366 = vrot.lane.b32.xlu1 %v4131_v60, %s3481_s24 }
 0x2c9   : > { %2294 = vrot.lane.b32.xlu0 %v4131_v60, %s3473_s19  ;;  %2298 = vrot.lane.b32.xlu1 %v4133_v61, %s3473_s19 }
 0x2cd   : > { %2101 = vrot.lane.b32.xlu0 %v4131_v60, %s3482_s17  ;;  %2174 = vrot.lane.b32.xlu1 %v4131_v60, %s3474_s21 }
 0x2d1   : > { %2105 = vrot.lane.b32.xlu0 %v4133_v61, %s3482_s17  ;;  %2178 = vrot.lane.b32.xlu1 %v4133_v61, %s3474_s21 }
 0x2d5   : > { %1955 = vrot.lane.b32.xlu0 %v4131_v60, %s3483_s23  ;;  %2028 = vrot.lane.b32.xlu1 %v4131_v60, %s3484_s26 }
 0x2d9   : > { %1959 = vrot.lane.b32.xlu0 %v4133_v61, %s3483_s23  ;;  %2032 = vrot.lane.b32.xlu1 %v4133_v61, %s3484_s26 }
 0x2dd   : > { %2441 = vrot.lane.b32.xlu0 %v4167_v46, %s3480_s25  ;;  %2514 = vrot.lane.b32.xlu1 %v4167_v46, %s3479_s22 }
 0x2e1   : > { %2445 = vrot.lane.b32.xlu0 %v4173_v63, %s3480_s25  ;;  %2518 = vrot.lane.b32.xlu1 %v4173_v63, %s3479_s22 }
 0x2e5   : > { %2296 = vrot.lane.b32.xlu0 %v4167_v46, %s3473_s19  ;;  %2368 = vrot.lane.b32.xlu1 %v4167_v46, %s3481_s24 }
 0x2e9   : > { %2300 = vrot.lane.b32.xlu0 %v4173_v63, %s3473_s19  ;;  %2372 = vrot.lane.b32.xlu1 %v4173_v63, %s3481_s24 }
 0x2ed   : > { %2176 = vrot.lane.b32.xlu0 %v4167_v46, %s3474_s21  ;;  %2103 = vrot.lane.b32.xlu1 %v4167_v46, %s3482_s17 }
 0x2f1   : > { %2180 = vrot.lane.b32.xlu0 %v4173_v63, %s3474_s21  ;;  %2107 = vrot.lane.b32.xlu1 %v4173_v63, %s3482_s17 }
 0x2f5   : > { %2030 = vrot.lane.b32.xlu0 %v4167_v46, %s3484_s26  ;;  %1957 = vrot.lane.b32.xlu1 %v4167_v46, %s3483_s23 }
 0x2f9   : > { %2034 = vrot.lane.b32.xlu0 %v4173_v63, %s3484_s26  ;;  %1961 = vrot.lane.b32.xlu1 %v4173_v63, %s3483_s23 }
 0x2fc   : > { %v4207_v2 = vpop.f32.mrf.mxu1  ;;  %v4221_v6 = vpop.f32.mrf.mxu0 }
 0x2fd   : > { %2447 = vrot.lane.b32.xlu1 %v4207_v2, %s3480_s25  ;;  %2520 = vrot.lane.b32.xlu0 %v4207_v2, %s3479_s22 }
 0x2fe   : > { %v4239_v7 = vpop.f32.mrf.mxu0  ;;  %v4249_v18 = vpop.f32.mrf.mxu1 }
 0x301   : > { %2302 = vrot.lane.b32.xlu1 %v4207_v2, %s3473_s19  ;;  %2374 = vrot.lane.b32.xlu0 %v4207_v2, %s3481_s24 }
 0x305   : > { %2451 = vrot.lane.b32.xlu1 %v4221_v6, %s3480_s25  ;;  %2524 = vrot.lane.b32.xlu0 %v4221_v6, %s3479_s22 }
 0x309   : > { %2306 = vrot.lane.b32.xlu1 %v4221_v6, %s3473_s19  ;;  %2378 = vrot.lane.b32.xlu0 %v4221_v6, %s3481_s24 }
 0x30d   : > { %2182 = vrot.lane.b32.xlu1 %v4207_v2, %s3474_s21  ;;  %2109 = vrot.lane.b32.xlu0 %v4207_v2, %s3482_s17 }
 0x311   : > { %2186 = vrot.lane.b32.xlu1 %v4221_v6, %s3474_s21  ;;  %2113 = vrot.lane.b32.xlu0 %v4221_v6, %s3482_s17 }
 0x315   : > { %2036 = vrot.lane.b32.xlu1 %v4207_v2, %s3484_s26  ;;  %2115 = vrot.lane.b32.xlu0 %v4239_v7, %s3482_s17 }
 0x319   : > { %2188 = vrot.lane.b32.xlu1 %v4239_v7, %s3474_s21  ;;  %1969 = vrot.lane.b32.xlu0 %v4239_v7, %s3483_s23 }
 0x31d   : > { %2042 = vrot.lane.b32.xlu1 %v4239_v7, %s3484_s26  ;;  %2449 = vrot.lane.b32.xlu0 %v4249_v18, %s3480_s25 }
 0x321   : > { %2453 = vrot.lane.b32.xlu0 %v4239_v7, %s3480_s25  ;;  %2522 = vrot.lane.b32.xlu1 %v4249_v18, %s3479_s22 }
 0x325   : > { %1963 = vrot.lane.b32.xlu0 %v4207_v2, %s3483_s23  ;;  %2526 = vrot.lane.b32.xlu1 %v4239_v7, %s3479_s22 }
 0x329   : > { %2304 = vrot.lane.b32.xlu0 %v4249_v18, %s3473_s19  ;;  %2376 = vrot.lane.b32.xlu1 %v4249_v18, %s3481_s24 }
 0x32d   : > { %2308 = vrot.lane.b32.xlu0 %v4239_v7, %s3473_s19  ;;  %2380 = vrot.lane.b32.xlu1 %v4239_v7, %s3481_s24  ;;  %s3278_s19 = sshll.u32 %s3267_s30, 3 }
 0x32e   : > { %p548_p4 = scmp.lt.s32.totalorder %s3278_s19, 15 }
 0x32f   : > { %v4271_v17 = vpop.permute.xlu0 %2516  ;;  %v4273_v8 = vpop.permute.xlu1 %2512 }
 0x330   : > { %s4929_s19 = smov (!%p548_p4, %s3278_s19), 15 }
 0x331   : > { %2184 = vrot.lane.b32.xlu0 %v4249_v18, %s3474_s21  ;;  %2040 = vrot.lane.b32.xlu1 %v4221_v6, %s3484_s26  ;;  %s4834_s21 = sshll.u32 %s4929_s19, 2 }
 0x332   : > { %s4841_s28 = scalar_lea.vmem %s4903_s3, %s4834_s21  ;;  %s4863_s16 = scalar_lea.vmem %s4914_s14, %s4834_s21 }
 0x333   : > { %v4279_v9 = vpop.permute.xlu0 %2439  ;;  %v4281_v10 = vpop.permute.xlu1 %2443  ;;  %s4870_s25 = scalar_lea.vmem %s4911_s11, %s4834_s21 }
 0x335   : > { %2038 = vrot.lane.b32.xlu0 %v4249_v18, %s3484_s26  ;;  %2111 = vrot.lane.b32.xlu1 %v4249_v18, %s3482_s17 }
 0x337   : > { %v4287_v11 = vpop.permute.xlu0 %2370  ;;  %v4289_v12 = vpop.permute.xlu1 %2366 }
 0x339   : > { %1967 = vrot.lane.b32.xlu0 %v4221_v6, %s3483_s23  ;;  %1965 = vrot.lane.b32.xlu1 %v4249_v18, %s3483_s23 }
 0x33b   : > { %v4301_v21 = vpop.permute.xlu0 %2294  ;;  %v4303_v23 = vpop.permute.xlu1 %2298 }
 0x33d   : > { %2967 = vperm.xlu0 %3459, %v584_v14   ;;  %2951 = vperm.xlu1 %3460, %v583_v15  }
 0x33f   : > { %v4311_v26 = vpop.permute.xlu0 %2101  ;;  %v4313_v30 = vpop.permute.xlu1 %2174 }
 0x341   : > { %1944 = vperm.xlu0 %3459, %v585_v24   ;;  %2659 = vperm.xlu1 %3460, %v582_v25   ;;  %v2321_v24 = vrot.slane %v4343_v28, %v3749_v42 }
 0x343   : > { %v4315_v31 = vpop.permute.xlu0 %2105  ;;  %v4317_v32 = vpop.permute.xlu1 %2178 }
 0x347   : > { %v4319_v33 = vpop.permute.xlu0 %1955  ;;  %v4321_v34 = vpop.permute.xlu1 %2028 }
 0x34b   : > { %v4323_v35 = vpop.permute.xlu0 %1959  ;;  %v4325_v36 = vpop.permute.xlu1 %2032 }
 0x34f   : > { %v2442_v40 = vpop.permute.xlu0 %2441  ;;  %v2515_v41 = vpop.permute.xlu1 %2514 }
 0x350   : > { %v2461_v45 = vsel %vm2455_vm10, %v2442_v40, %v4281_v10  ;;  %v2534_v48 = vsel %vm2528_vm11, %v2515_v41, %v4271_v17  ;;  %v2535_v49 = vsel %vm2528_vm11, %v4273_v8, %v2515_v41  ;;  %v2462_v50 = vsel %vm2455_vm10, %v4279_v9, %v2442_v40 }
 0x351   : > { %v2569_v51 = vmul.f32 %v3420_v38, %v2535_v49  ;;  %v2570_v52 = vmul.f32 %v3421_v27, %v2534_v48  ;;  %v2497_v53 = vmul.f32 %v2471_v39, %v2461_v45  ;;  %v2496_v56 = vmul.f32 %v2467_v43, %v2462_v50 }
 0x352   : > { %v2253_v43 = vrot.slane %v4332_v37, %v3752_v44  ;;  %v2249_v45 = vrot.slane %v4343_v28, %v3752_v44 }
 0x353   : > { %v2446_v54 = vpop.permute.xlu0 %2445  ;;  %2679 = vmatprep.subr.mxu1 %v2570_v52  ;;  %v2519_v55 = vpop.permute.xlu1 %2518  ;;  %v2205_v52 = vrot.slane %v4332_v37, %v3756_v47 }
 0x354   : > { %2680 = vmatpush1.msra.mxu1 %v2569_v51 }
 0x355   : > { %2681 = vmatprep.subr.mxu1 %v2497_v53  ;;  %v2279_v53 = vmul.f32 %v2253_v43, %v4167_v46  ;;  %v2533_v43 = vsel %vm2528_vm11, %v4271_v17, %v2519_v55  ;;  %v2460_v17 = vsel %vm2455_vm10, %v4281_v10, %v2446_v54 }
 0x356   : > { %2682 = vmatpush1.msra.mxu1 %v2496_v56  ;;  %v2278_v56 = vmul.f32 %v2249_v45, %v4131_v60 }
 0x357   : > { %v2297_v14 = vpop.permute.xlu0 %2296  ;;  %v2369_v15 = vpop.permute.xlu1 %2368 }
 0x358   : > { %v2315_v25 = vsel %vm861_vm4, %v2297_v14, %v4303_v23  ;;  %v2388_v38 = vsel %vm2382_vm12, %v2369_v15, %v4287_v11  ;;  %v2389_v27 = vsel %vm2382_vm12, %v4289_v12, %v2369_v15  ;;  %v2316_v39 = vsel %vm861_vm4, %v4301_v21, %v2297_v14 }
 0x359   : > { %v2423_v40 = vmul.f32 %v2394_v57, %v2389_v27  ;;  %v2424_v41 = vmul.f32 %v2398_v58, %v2388_v38  ;;  %v2351_v48 = vmul.f32 %v2325_v59, %v2315_v25  ;;  %v2350_v51 = vmul.f32 %v2321_v24, %v2316_v39  ;;  %v4410_v27 = vld [vmem:[%s4906_s6 + $0x18] sm:$0xff] }
 0x35a   : > { %v3423_v39 = vld [vmem:[%s4906_s6 + $0x58] ss:$0 sm:$0xff]  ;;  %v2479_v45 = vrot.slane %v4410_v27, %v3717_v20 }
 0x35b   : > { %v2301_v49 = vpop.permute.xlu0 %2300  ;;  %2683 = vmatprep.subr.mxu1 %v2424_v41  ;;  %v2373_v50 = vpop.permute.xlu1 %2372  ;;  %v3422_v41 = vld [vmem:[%s4906_s6 + $0x50] ss:$0 sm:$0xff] }
 0x35c   : > { %2684 = vmatpush1.msra.mxu1 %v2423_v40  ;;  %v4418_v40 = vld [vmem:[%s4906_s6 + $0x10] sm:$0xff]  ;;  %v2571_v19 = vmul.f32 %v3422_v41, %v2533_v43  ;;  %v2387_v0 = vsel %vm2382_vm12, %v4287_v11, %v2373_v50  ;;  %v2314_v43 = vsel %vm861_vm4, %v4303_v23, %v2301_v49 }
 0x35d   : > { %2685 = vmatprep.subr.mxu1 %v2351_v48  ;;  %v2402_v1 = vrot.slane %v4418_v40, %v3737_v29 }
 0x35e   : > { %2686 = vmatpush1.msra.mxu1 %v2350_v51 }
 0x35f   : > { %v2177_v57 = vpop.permute.xlu0 %2176  ;;  %v4390_v58 = vpop.permute.xlu1 %2103  ;;  %2687 = vmatprep.subr.mxu1 %v2279_v53 }
 0x360   : > { %v2196_v59 = vsel %vm830_vm5, %v4313_v30, %v2177_v57  ;;  %2688 = vmatpush1.msra.mxu1 %v2278_v56 }
 0x361   : > { %v2231_v14 = vmul.f32 %v2205_v52, %v2196_v59  ;;  %v2475_v52 = vrot.slane %v4418_v40, %v3717_v20 }
 0x363   : > { %v4395_v15 = vpop.permute.xlu0 %2180  ;;  %v4397_v24 = vpop.permute.xlu1 %2107  ;;  %2689 = vmatprep.subr.mxu1 %v2231_v14  ;;  %v2406_v14 = vrot.slane %v4410_v27, %v3737_v29 }
 0x367   : > { %v4399_v25 = vpop.permute.xlu0 %2030  ;;  %v4401_v46 = vpop.permute.xlu1 %1957 }
 0x36b   : > { %v4403_v60 = vpop.permute.xlu0 %2034  ;;  %v4405_v38 = vpop.permute.xlu1 %1961 }
 0x36f   : > { %v4428_v48 = vpop.permute.xlu1 %2447  ;;  %v4430_v51 = vpop.permute.xlu0 %2520 }
 0x370   : > { %v2459_v53 = vsel %vm2455_vm10, %v2446_v54, %v4428_v48  ;;  %v2532_v56 = vsel %vm2528_vm11, %v2519_v55, %v4430_v51  ;;  %v2333_v55 = vrot.slane %v4410_v27, %v3749_v42  ;;  %v2498_v54 = vmul.f32 %v2475_v52, %v2460_v17 }
 0x371   : > { %v2572_v59 = vmul.f32 %v3423_v39, %v2532_v56  ;;  %v2499_v4 = vmul.f32 %v2479_v45, %v2459_v53  ;;  %v2329_v39 = vrot.slane %v4418_v40, %v3749_v42  ;;  %v2261_v52 = vrot.slane %v4410_v27, %v3752_v44 }
 0x372   : > { %v2425_v53 = vmul.f32 %v2402_v1, %v2387_v0  ;;  %v2257_v56 = vrot.slane %v4418_v40, %v3752_v44  ;;  %v2213_v17 = vrot.slane %v4410_v27, %v3756_v47  ;;  %v2194_v0 = vsel %vm830_vm5, %v4317_v32, %v4395_v15 }
 0x373   : > { %v4452_v3 = vpop.permute.xlu1 %2302  ;;  %2750 = vmatprep.subr.mxu0 %v2572_v59  ;;  %v4454_v10 = vpop.permute.xlu0 %2374  ;;  %v2352_v23 = vmul.f32 %v2329_v39, %v2314_v43  ;;  %v2195_v1 = vsel %vm830_vm5, %v2177_v57, %v4317_v32  ;;  %v2123_v32 = vsel %vm2117_vm13, %v4390_v58, %v4315_v31 }
 0x374   : > { %v2313_v41 = vsel %vm861_vm4, %v2301_v49, %v4452_v3  ;;  %v2386_v11 = vsel %vm2382_vm12, %v2373_v50, %v4454_v10  ;;  %2751 = vmatpush1.msra.mxu0 %v2571_v19  ;;  %v2141_v49 = vrot.slane %v4410_v27, %v3776_v62  ;;  %v2280_v39 = vmul.f32 %v2257_v56, %v4133_v61 }
 0x375   : > { %v2426_v45 = vmul.f32 %v2406_v14, %v2386_v11  ;;  %2752 = vmatprep.subr.mxu0 %v2499_v4  ;;  %v2353_v59 = vmul.f32 %v2333_v55, %v2313_v41  ;;  %v2209_v4 = vrot.slane %v4418_v40, %v3756_v47  ;;  %v2281_v14 = vmul.f32 %v2261_v52, %v4173_v63 }
 0x376   : > { %2753 = vmatpush1.msra.mxu0 %v2498_v54  ;;  %v2137_v55 = vrot.slane %v4418_v40, %v3776_v62  ;;  %v2122_v54 = vsel %vm2117_vm13, %v4315_v31, %v4397_v24  ;;  %v2233_v57 = vmul.f32 %v2213_v17, %v2194_v0  ;;  %v2068_v63 = vrot.slane %v4410_v27, %v3786_v5 }
 0x377   : > { %v4473_v50 = vpop.permute.xlu1 %2451  ;;  %2754 = vmatprep.subr.mxu0 %v2426_v45  ;;  %v4475_v19 = vpop.permute.xlu0 %2524  ;;  %v2232_v43 = vmul.f32 %v2209_v4, %v2195_v1  ;;  %v2064_v45 = vrot.slane %v4418_v40, %v3786_v5  ;;  %v2049_v61 = vsel %vm2044_vm14, %v4325_v36, %v4403_v60  ;;  %v2161_v31 = vmul.f32 %v2141_v49, %v2122_v54  ;;  %v4538_v49 = vld [vmem:[%s4908_s8] sm:$0xf] }
 0x378   : > { %2755 = vmatpush1.msra.mxu0 %v2425_v53  ;;  %v2050_v52 = vsel %vm2044_vm14, %v4399_v25, %v4325_v36  ;;  %v1995_v53 = vrot.slane %v4410_v27, %v3798_v22  ;;  %v2160_v56 = vmul.f32 %v2137_v55, %v2123_v32  ;;  %v1991_v17 = vrot.slane %v4418_v40, %v3798_v22 }
 0x379   : > { %2756 = vmatprep.subr.mxu0 %v2353_v59  ;;  %v1976_v59 = vsel %vm1971_vm15, %v4323_v35, %v4405_v38  ;;  %v2088_v36 = vmul.f32 %v2068_v63, %v2049_v61  ;;  %v2087_v0 = vmul.f32 %v2064_v45, %v2050_v52  ;;  %v4921_v55 = vmov 0.0  }
 0x37a   : > { %2757 = vmatpush1.msra.mxu0 %v2352_v23  ;;  %v1977_v23 = vsel %vm1971_vm15, %v4401_v46, %v4323_v35  ;;  %v2015_v40 = vmul.f32 %v1995_v53, %v1976_v59  ;;  %v2201_v32 = vrot.slane %v4343_v28, %v3756_v47  ;;  %v2124_v63 = vsel %vm2117_vm13, %v4311_v26, %v4390_v58 }
 0x37b   : > { %v4504_v41 = vpop.permute.xlu1 %2306  ;;  %2758 = vmatprep.subr.mxu0 %v2281_v14  ;;  %v4506_v11 = vpop.permute.xlu0 %2378  ;;  %v2014_v1 = vmul.f32 %v1991_v17, %v1977_v23  ;;  %v2051_v53 = vsel %vm2044_vm14, %v4321_v34, %v4399_v25  ;;  %v2056_v17 = vrot.slane %v4343_v28, %v3786_v5  ;;  %v1987_v23 = vrot.slane %v4332_v37, %v3798_v22 }
 0x37c   : > { %2759 = vmatpush1.msra.mxu0 %v2280_v39  ;;  %v1983_v25 = vrot.slane %v4343_v28, %v3798_v22 }
 0x37d   : > { %2760 = vmatprep.subr.mxu0 %v2233_v57  ;;  %v2133_v57 = vrot.slane %v4332_v37, %v3776_v62 }
 0x37e   : > { %2761 = vmatpush1.msra.mxu0 %v2232_v43  ;;  %v2129_v43 = vrot.slane %v4343_v28, %v3776_v62  ;;  %v4607_v28 = vld [vmem:[%s4906_s6 + $0x30] sm:$0xff] }
 0x37f   : > { %v4531_v4 = vpop.permute.xlu1 %2182  ;;  %2762 = vmatprep.subr.mxu0 %v2161_v31  ;;  %v4533_v27 = vpop.permute.xlu0 %2109  ;;  %v2060_v31 = vrot.slane %v4332_v37, %v3786_v5  ;;  %v2159_v59 = vmul.f32 %v2133_v57, %v2124_v63  ;;  %v4612_v63 = vld [vmem:[%s4906_s6 + $0x28] sm:$0xff] }
 0x380   : > { %2763 = vmatpush1.msra.mxu0 %v2160_v56 }
 0x381   : > { %2764 = vmatprep.subr.mxu0 %v2088_v36 }
 0x382   : > { %2765 = vmatpush1.msra.mxu0 %v2087_v0 }
 0x383   : > { %v4540_v14 = vpop.permute.xlu1 %2186  ;;  %2766 = vmatprep.subr.mxu0 %v2015_v40  ;;  %v4542_v35 = vpop.permute.xlu0 %2113 }
 0x384   : > { %2767 = vmatpush1.msra.mxu0 %v2014_v1  ;;  %v2086_v1 = vmul.f32 %v2060_v31, %v2051_v53  ;;  %v4625_v31 = vld [vmem:[%s4906_s6 + $0x38] sm:$0xff] }
 0x385   : > { %3429 = vmatmul.mubr.msk.f32.vlgmr.msra.gmra.mxu0 %vm956_vm9, %v4538_v49 }
 0x386   : > { %2942 = vmatprep.mubr.f32.mxu0 %v4921_v55 }
 0x387   : > { %v4547_v54 = vpop.permute.xlu1 %2036  ;;  %v4549_v39 = vpop.permute.xlu0 %2115 }
 0x388   : > { %v2125_v52 = vsel %vm2117_vm13, %v4549_v39, %v4311_v26  ;;  %v1978_v26 = vsel %vm1971_vm15, %v4319_v33, %v4401_v46 }
 0x389   : > { %v2158_v36 = vmul.f32 %v2129_v43, %v2125_v52  ;;  %v2013_v57 = vmul.f32 %v1987_v23, %v1978_v26 }
 0x38b   : > { %v4561_v45 = vpop.permute.xlu1 %2188  ;;  %v4563_v61 = vpop.permute.xlu0 %1969 }
 0x38c   : > { %v2197_v58 = vsel %vm830_vm5, %v4561_v45, %v4313_v30  ;;  %v4590_v30 = vld [vmem:[%s4906_s6 + $0x20] sm:$0xff]  ;;  %v1979_v37 = vsel %vm1971_vm15, %v4563_v61, %v4319_v33 }
 0x38d   : > { %v2230_v56 = vmul.f32 %v2201_v32, %v2197_v58  ;;  %v3424_v33 = vld [vmem:[%s4906_s6 + $0x60] ss:$0 sm:$0xff]  ;;  %v2265_v43 = vrot.slane %v4590_v30, %v3752_v44  ;;  %v2012_v52 = vmul.f32 %v1983_v25, %v1979_v37  ;;  %v2487_v58 = vrot.slane %v4612_v63, %v3717_v20 }
 0x38e   : > { %v2273_v37 = vrot.slane %v4607_v28, %v3752_v44 }
 0x38f   : > { %2690 = vmatpush1.msra.mxu1 %v2230_v56  ;;  %v4594_v0 = vpop.permute.xlu1 %2042  ;;  %v2450_v40 = vpop.permute.xlu0 %2449 }
 0x390   : > { %v2052_v46 = vsel %vm2044_vm14, %v4594_v0, %v4321_v34  ;;  %2691 = vmatprep.subr.mxu1 %v2159_v59  ;;  %v3425_v34 = vld [vmem:[%s4906_s6 + $0x68] ss:$0 sm:$0xff]  ;;  %v2457_v59 = vsel %vm2455_vm10, %v2450_v40, %v4473_v50 }
 0x391   : > { %v2085_v32 = vmul.f32 %v2056_v17, %v2052_v46  ;;  %2692 = vmatpush1.msra.mxu1 %v2158_v36  ;;  %v2483_v17 = vrot.slane %v4590_v30, %v3717_v20  ;;  %v2458_v36 = vsel %vm2455_vm10, %v4428_v48, %v2450_v40  ;;  %v2491_v46 = vrot.slane %v4607_v28, %v3717_v20  ;;  %v3427_v48 = vld [vmem:[%s4906_s6 + $0x78] ss:$0 sm:$0xff] }
 0x392   : > { %2693 = vmatprep.subr.mxu1 %v2086_v1  ;;  %v2269_v40 = vrot.slane %v4612_v63, %v3752_v44 }
 0x393   : > { %2694 = vmatpush1.msra.mxu1 %v2085_v32  ;;  %v2454_v53 = vpop.permute.xlu0 %2453  ;;  %v2523_v56 = vpop.permute.xlu1 %2522  ;;  %v4658_v32 = vmul.f32 %v2265_v43, %v4207_v2 }
 0x394   : > { %v2530_v23 = vsel %vm2528_vm11, %v2523_v56, %v4475_v19  ;;  %v2531_v26 = vsel %vm2528_vm11, %v4430_v51, %v2523_v56  ;;  %2695 = vmatprep.subr.mxu1 %v2013_v57  ;;  %v3426_v51 = vld [vmem:[%s4906_s6 + $0x70] ss:$0 sm:$0xff]  ;;  %v2277_v57 = vrot.slane %v4625_v31, %v3752_v44  ;;  %v2463_v2 = vsel %vm2455_vm10, %v2454_v53, %v4279_v9 }
 0x395   : > { %v2573_v25 = vmul.f32 %v3424_v33, %v2531_v26  ;;  %v2574_v1 = vmul.f32 %v3425_v34, %v2530_v23  ;;  %2696 = vmatpush1.msra.mxu1 %v2012_v52  ;;  %v2501_v33 = vmul.f32 %v2487_v58, %v2457_v59  ;;  %v2495_v34 = vrot.slane %v4625_v31, %v3717_v20 }
 0x396   : > { %3428 = vmatmul.mubr.msk.f32.vlgmr.msra.gmra.mxu1 %vm956_vm9, %v4538_v49  ;;  %v2410_v23 = vrot.slane %v4590_v30, %v3737_v29  ;;  %v2500_v26 = vmul.f32 %v2483_v17, %v2458_v36  ;;  %v2456_v43 = vsel %vm2455_vm10, %v4473_v50, %v2454_v53  ;;  %v2414_v17 = vrot.slane %v4612_v63, %v3737_v29 }
 0x397   : > { %v4664_v52 = vpop.permute.xlu0 %1963  ;;  %2821 = vmatprep.subr.mxu1 %v2574_v1  ;;  %v2527_v56 = vpop.permute.xlu1 %2526  ;;  %2871 = vmatprep.mubr.f32.mxu1 %v4921_v55  ;;  %v2217_v9 = vrot.slane %v4590_v30, %v3756_v47  ;;  %v4687_v59 = vmul.f32 %v2277_v57, %v4239_v7  ;;  %v2503_v36 = vmul.f32 %v2495_v34, %v2463_v2 }
 0x398   : > { %v2529_v44 = vsel %vm2528_vm11, %v4475_v19, %v2527_v56  ;;  %v2536_v20 = vsel %vm2528_vm11, %v2527_v56, %v4273_v8  ;;  %2822 = vmatpush1.msra.mxu1 %v2573_v25  ;;  %v2283_v19 = vmul.f32 %v2269_v40, %v4249_v18  ;;  %v4690_v8 = vmul.f32 %v2273_v37, %v4221_v6 }
 0x399   : > { %v2575_v58 = vmul.f32 %v3426_v51, %v2529_v44  ;;  %v2576_v55 = vmul.f32 %v3427_v48, %v2536_v20  ;;  %2823 = vmatprep.subr.mxu1 %v2501_v33  ;;  %v2337_v50 = vrot.slane %v4590_v30, %v3749_v42  ;;  %v2341_v53 = vrot.slane %v4612_v63, %v3749_v42 }
 0x39a   : > { %2824 = vmatpush1.msra.mxu1 %v2500_v26  ;;  %v2418_v51 = vrot.slane %v4607_v28, %v3737_v29  ;;  %v2502_v18 = vmul.f32 %v2491_v46, %v2456_v43  ;;  %v2422_v46 = vrot.slane %v4625_v31, %v3737_v29  ;;  %v2145_v33 = vrot.slane %v4590_v30, %v3776_v62 }
 0x39b   : > { %v2305_v25 = vpop.permute.xlu0 %2304  ;;  %2892 = vmatprep.subr.mxu0 %v2576_v55  ;;  %v2377_v1 = vpop.permute.xlu1 %2376  ;;  %v2072_v34 = vrot.slane %v4590_v30, %v3786_v5  ;;  %v2229_v56 = vrot.slane %v4625_v31, %v3756_v47  ;;  %v2345_v29 = vrot.slane %v4607_v28, %v3749_v42  ;;  %v2349_v26 = vrot.slane %v4625_v31, %v3749_v42 }
 0x39c   : > { %v2311_v7 = vsel %vm861_vm4, %v2305_v25, %v4504_v41  ;;  %v2384_v6 = vsel %vm2382_vm12, %v2377_v1, %v4506_v11  ;;  %v2385_v37 = vsel %vm2382_vm12, %v4454_v10, %v2377_v1  ;;  %2893 = vmatpush1.msra.mxu0 %v2575_v58  ;;  %v2312_v48 = vsel %vm861_vm4, %v4452_v3, %v2305_v25 }
 0x39d   : > { %v2427_v40 = vmul.f32 %v2410_v23, %v2385_v37  ;;  %v2428_v57 = vmul.f32 %v2414_v17, %v2384_v6  ;;  %2894 = vmatprep.subr.mxu0 %v2503_v36  ;;  %v2157_v10 = vrot.slane %v4625_v31, %v3776_v62  ;;  %v1999_v3 = vrot.slane %v4590_v30, %v3798_v22 }
 0x39e   : > { %2895 = vmatpush1.msra.mxu0 %v2502_v18  ;;  %v2355_v23 = vmul.f32 %v2341_v53, %v2311_v7  ;;  %v2354_v20 = vmul.f32 %v2337_v50, %v2312_v48  ;;  %v2221_v50 = vrot.slane %v4612_v63, %v3756_v47  ;;  %v2080_v53 = vrot.slane %v4607_v28, %v3786_v5 }
 0x39f   : > { %v2309_v2 = vpop.permute.xlu0 %2308  ;;  %2825 = vmatprep.subr.mxu1 %v2428_v57  ;;  %v2381_v44 = vpop.permute.xlu1 %2380  ;;  %v2149_v18 = vrot.slane %v4612_v63, %v3776_v62  ;;  %v2190_v7 = vsel %vm830_vm5, %v4540_v14, %v4561_v45  ;;  %v2011_v48 = vrot.slane %v4625_v31, %v3798_v22 }
 0x3a0   : > { %v2317_v43 = vsel %vm861_vm4, %v2309_v2, %v4301_v21  ;;  %v2383_v58 = vsel %vm2382_vm12, %v4506_v11, %v2381_v44  ;;  %v2390_v55 = vsel %vm2382_vm12, %v2381_v44, %v4289_v12  ;;  %2826 = vmatpush1.msra.mxu1 %v2427_v40  ;;  %v2310_v42 = vsel %vm861_vm4, %v4504_v41, %v2309_v2 }
 0x3a1   : > { %v2429_v17 = vmul.f32 %v2418_v51, %v2383_v58  ;;  %v2430_v36 = vmul.f32 %v2422_v46, %v2390_v55  ;;  %2827 = vmatprep.subr.mxu1 %v2355_v23  ;;  %v2225_v21 = vrot.slane %v4607_v28, %v3756_v47  ;;  %v2084_v11 = vrot.slane %v4625_v31, %v3786_v5 }
 0x3a2   : > { %2828 = vmatpush1.msra.mxu1 %v2354_v20  ;;  %v2076_v12 = vrot.slane %v4612_v63, %v3786_v5  ;;  %v2193_v41 = vsel %vm830_vm5, %v4395_v15, %v4531_v4  ;;  %v2357_v25 = vmul.f32 %v2349_v26, %v2317_v43  ;;  %v2356_v6 = vmul.f32 %v2345_v29, %v2310_v42  ;;  %v4844_v42 = vpop.f32.mrf.mxu0 }
 0x3a3   : > { %v2185_v1 = vpop.permute.xlu0 %2184  ;;  %2896 = vmatprep.subr.mxu0 %v2430_v36  ;;  %v2041_v51 = vpop.permute.xlu1 %2040  ;;  %2829 = vmatprep.subr.mxu1 %v2283_v19  ;;  %v2153_v19 = vrot.slane %v4607_v28, %v3776_v62  ;;  %v2003_v40 = vrot.slane %v4612_v63, %v3798_v22  ;;  %v2234_v45 = vmul.f32 %v2217_v9, %v2193_v41 }
 0x3a4   : > { %v2192_v37 = vsel %vm830_vm5, %v4531_v4, %v2185_v1  ;;  %2830 = vmatpush1.msra.mxu1 %v4658_v32  ;;  %2897 = vmatpush1.msra.mxu0 %v2429_v17  ;;  %v2121_v4 = vsel %vm2117_vm13, %v4397_v24, %v4533_v27  ;;  %v2048_v32 = vsel %vm2044_vm14, %v4403_v60, %v4547_v54  ;;  %v4846_v36 = vpop.f32.mrf.mxu0 }
 0x3a5   : > { %v2235_v15 = vmul.f32 %v2221_v50, %v2192_v37  ;;  %2898 = vmatprep.subr.mxu0 %v2357_v25  ;;  %v2191_v57 = vsel %vm830_vm5, %v2185_v1, %v4540_v14  ;;  %v2118_v47 = vsel %vm2117_vm13, %v4542_v35, %v4549_v39  ;;  %v2237_v63 = vmul.f32 %v2229_v56, %v2190_v7  ;;  %v592_v37 = vld [vmem:[%s4841_s28] sm:$0xff] }
 0x3a6   : > { %2899 = vmatpush1.msra.mxu0 %v2356_v6  ;;  %v2045_v24 = vsel %vm2044_vm14, %v2041_v51, %v4594_v0  ;;  %v2236_v56 = vmul.f32 %v2225_v21, %v2191_v57  ;;  %v2007_v29 = vrot.slane %v4607_v28, %v3798_v22  ;;  %v1894_v57 = vpop.f32.mrf.mxu1 }
 0x3a7   : > { %v2039_v9 = vpop.permute.xlu0 %2038  ;;  %2900 = vmatprep.subr.mxu0 %v4687_v59  ;;  %v2112_v46 = vpop.permute.xlu1 %2111  ;;  %2831 = vmatprep.subr.mxu1 %v2235_v15  ;;  %v2092_v26 = vmul.f32 %v2084_v11, %v2045_v24 }
 0x3a8   : > { %v2046_v60 = vsel %vm2044_vm14, %v2039_v9, %v2041_v51  ;;  %v2047_v14 = vsel %vm2044_vm14, %v4547_v54, %v2039_v9  ;;  %v2119_v39 = vsel %vm2117_vm13, %v2112_v46, %v4542_v35  ;;  %v2120_v0 = vsel %vm2117_vm13, %v4533_v27, %v2112_v46  ;;  %2832 = vmatpush1.msra.mxu1 %v2234_v45  ;;  %v4922_v51 = vld [vmem:[#allocation6_spill] sm:$0xff]  ;;  %v1896_v46 = vpop.f32.mrf.mxu1 }
 0x3a9   : > { %v2163_v59 = vmul.f32 %v2149_v18, %v2120_v0  ;;  %v2164_v23 = vmul.f32 %v2153_v19, %v2119_v39  ;;  %2901 = vmatpush1.msra.mxu0 %v4690_v8  ;;  %v2162_v54 = vmul.f32 %v2145_v33, %v2121_v4  ;;  %v2089_v35 = vmul.f32 %v2072_v34, %v2048_v32  ;;  %v4923_v19 = vld [vmem:[#allocation7_spill] sm:$0xff] }
 0x3aa   : > { %v2165_v27 = vmul.f32 %v2157_v10, %v2118_v47  ;;  %v1975_v8 = vsel %vm1971_vm15, %v4405_v38, %v4664_v52  ;;  %2902 = vmatprep.subr.mxu0 %v2237_v63  ;;  %v2090_v28 = vmul.f32 %v2076_v12, %v2047_v14  ;;  %v2091_v2 = vmul.f32 %v2080_v53, %v2046_v60 }
 0x3ab   : > { %2903 = vmatpush1.msra.mxu0 %v2236_v56  ;;  %v1968_v44 = vpop.permute.xlu0 %1967  ;;  %v1966_v33 = vpop.permute.xlu1 %1965  ;;  %2833 = vmatprep.subr.mxu1 %v2163_v59  ;;  %v2016_v20 = vmul.f32 %v1999_v3, %v1975_v8  ;;  %v593_v3 = vld [vmem:[%s4841_s28 + $0x8] sm:$0xff] }
 0x3ac   : > { %v1972_v5 = vsel %vm1971_vm15, %v1968_v44, %v4563_v61  ;;  %2904 = vmatprep.subr.mxu0 %v2165_v27  ;;  %v1973_v62 = vsel %vm1971_vm15, %v1966_v33, %v1968_v44  ;;  %v1974_v38 = vsel %vm1971_vm15, %v4664_v52, %v1966_v33  ;;  %2834 = vmatpush1.msra.mxu1 %v2162_v54  ;;  %v2954_v61 = vunpack.c.l.s4 %v3485_v13 }
 0x3ad   : > { %v2019_v31 = vmul.f32 %v2011_v48, %v1972_v5  ;;  %v2017_v34 = vmul.f32 %v2003_v40, %v1974_v38  ;;  %v2018_v10 = vmul.f32 %v2007_v29, %v1973_v62  ;;  %2905 = vmatpush1.msra.mxu0 %v2164_v23  ;;  %2835 = vmatprep.subr.mxu1 %v2090_v28  ;;  %v4924_v29 = vld [vmem:[#allocation4_spill] sm:$0xff] }
 0x3ae   : > { %2906 = vmatprep.subr.mxu0 %v2092_v26  ;;  %2836 = vmatpush1.msra.mxu1 %v2089_v35  ;;  %v2955_v22 = vunpack.c.0.s8 %v2954_v61  ;;  %v4925_v26 = vld [vmem:[#allocation5_spill] sm:$0xff] }
 0x3af   : > { %2907 = vmatpush1.msra.mxu0 %v2091_v2  ;;  %2837 = vmatprep.subr.mxu1 %v2017_v34  ;;  %v595_v34 = vld [vmem:[%s4841_s28 + $0x18] sm:$0xff] }
 0x3b0   : > { %2908 = vmatprep.subr.mxu0 %v2019_v31  ;;  %2838 = vmatpush1.msra.mxu1 %v2016_v20  ;;  %v2958_v30 = vsub.s32 %v2955_v22, %v3713_v16  ;;  %v594_v31 = vld [vmem:[%s4841_s28 + $0x10] sm:$0xff] }
 0x3b1   : > { %2909 = vmatpush1.msra.mxu0 %v2018_v10  ;;  %3430 = vmatmul.mubr.msk.f32.vlgmr.msra.gmra.mxu1 %vm956_vm9, %v4538_v49 }
 0x3b2   : > { %3431 = vmatmul.mubr.msk.f32.vlgmr.msra.gmra.mxu0 %vm956_vm9, %v4538_v49 }
 0x3b8   : > { %v2952_v52 = vpop.permute.xlu1 %2951  ;;  %v2968_v43 = vpop.permute.xlu0 %2967 }
 0x3b9   : > { %v2959_v49 = vrot.slane %v2952_v52, %v2958_v30  ;;  %v2975_v55 = vrot.slane %v2968_v43, %v2958_v30 }
 0x3bb   : > { %v2962_v58 = vmul.f32 %v2959_v49, %v593_v3  ;;  %v2961_v45 = vmul.f32 %v2959_v49, %v592_v37  ;;  %v2963_v10 = vmul.f32 %v2959_v49, %v594_v31  ;;  %v2964_v20 = vmul.f32 %v2959_v49, %v595_v34 }
 0x3bc   : > { %v4848_v16 = vpop.permute.xlu1 %2659  ;;  %v4851_v12 = vpop.permute.xlu0 %1944 }
 0x3bd   : > { %v2978_v17 = vadd.f32 %v2975_v55, %v2962_v58  ;;  %v1949_v18 = vadd.f32 %v4851_v12, %v4922_v51  ;;  %v1950_v48 = vadd.f32 %v4851_v12, %v4923_v19  ;;  %v2977_v24 = vadd.f32 %v2975_v55, %v2961_v45 }
 0x3be   : > { %v1947_v54 = vadd.f32 %v4851_v12, %v4924_v29  ;;  %v1948_v28 = vadd.f32 %v4851_v12, %v4925_v26  ;;  %v2979_v13 = vadd.f32 %v2975_v55, %v2963_v10  ;;  %v2980_v61 = vadd.f32 %v2975_v55, %v2964_v20 }
 0x3bf   : > { %v2982_v50 = vmax.f32 %v2978_v17, 0.0  ;;  %v2981_v60 = vmax.f32 %v2977_v24, 0.0  ;;  %v1951_v55 = vadd.f32 %v4851_v12, %v1894_v57 }
 0x3c0   : > { %v2983_v22 = vmax.f32 %v2979_v13, 0.0  ;;  %v2984_v52 = vmax.f32 %v2980_v61, 0.0 }
 0x3c1   : > { %v2990_v1 = vcombine.high %v2982_v50, %v2982_v50  ;;  %v2989_v23 = vcombine.high %v2981_v60, %v2981_v60 }
 0x3c2   : > { %v2992_v49 = vcombine.high %v2984_v52, %v2984_v52 }
 0x445   : > { %v2802_v21 = vpop.f32.mrf.mxu0 }
 0x446   : > { %v2803_v11 = vadd.f32 %v2802_v21, %v4848_v16 }
 0x447   : > { %v2804_v53 = vpop.f32.mrf.mxu0 }
 0x448   : > { %v2999_v41 = vadd.f32 %v2982_v50, %v2803_v11  ;;  %v2805_v25 = vadd.f32 %v2804_v53, %v4848_v16  ;;  %v2991_v11 = vcombine.high %v2983_v22, %v2983_v22 }
 0x44a   : > { %v3007_v7 = vmax.f32 %v2999_v41, 0.0  ;;  %v3000_v6 = vadd.f32 %v2990_v1, %v2805_v25 }
 0x44c   : > { %v3015_v15 = vadd.f32 %v3007_v7, %v1949_v18  ;;  %v3008_v40 = vmax.f32 %v3000_v6, 0.0  ;;  %v1953_v18 = vadd.f32 %v4851_v12, %v4844_v42 }
 0x44e   : > { %v3016_v4 = vadd.f32 %v3008_v40, %v1950_v48  ;;  %v3062_v32 = vcombine.low %v3007_v7, %v3008_v40  ;;  %v3023_v47 = vmax.f32 %v3015_v15, 0.0  ;;  %v1952_v15 = vadd.f32 %v4851_v12, %v1896_v46 }
 0x450   : > { %v3024_v63 = vmax.f32 %v3016_v4, 0.0  ;;  %3070 = vst [vmem:[%s4863_s16 + $0x8] sm:$0xff] %v3062_v32 }
 0x452   : > { %v3038_v9 = vcombine.low %v3023_v47, %v3024_v63 }
 0x454   : > { %3046 = vst [vmem:[%s4870_s25 + $0x8] sm:$0xff] %v3038_v9 }
 0x456   : > { %v2731_v14 = vpop.f32.mrf.mxu1 }
 0x457   : > { %v2732_v39 = vadd.f32 %v2731_v14, %v4848_v16 }
 0x458   : > { %v2733_v0 = vpop.f32.mrf.mxu1 }
 0x459   : > { %v2997_v56 = vadd.f32 %v2981_v60, %v2732_v39  ;;  %v2734_v59 = vadd.f32 %v2733_v0, %v4848_v16 }
 0x45b   : > { %v3005_v35 = vmax.f32 %v2997_v56, 0.0  ;;  %v2998_v27 = vadd.f32 %v2989_v23, %v2734_v59 }
 0x45d   : > { %v3013_v8 = vadd.f32 %v3005_v35, %v1947_v54  ;;  %v3006_v2 = vmax.f32 %v2998_v27, 0.0 }
 0x45f   : > { %v3014_v44 = vadd.f32 %v3006_v2, %v1948_v28  ;;  %v3061_v33 = vcombine.low %v3005_v35, %v3006_v2  ;;  %v3021_v5 = vmax.f32 %v3013_v8, 0.0 }
 0x461   : > { %v3022_v62 = vmax.f32 %v3014_v44, 0.0  ;;  %3069 = vst [vmem:[%s4863_s16] sm:$0xff] %v3061_v33 }
 0x463   : > { %v3037_v38 = vcombine.low %v3021_v5, %v3022_v62 }
 0x465   : > { %3045 = vst [vmem:[%s4870_s25] sm:$0xff] %v3037_v38 }
 0x471   : > { %v2873_v30 = vpop.f32.mrf.mxu1 }
 0x472   : > { %v2874_v3 = vadd.f32 %v2873_v30, %v4848_v16  ;;  %v2944_v43 = vpop.f32.mrf.mxu0 }
 0x473   : > { %v2945_v58 = vadd.f32 %v2944_v43, %v4848_v16  ;;  %v2875_v17 = vpop.f32.mrf.mxu1 }
 0x474   : > { %v3001_v50 = vadd.f32 %v2983_v22, %v2874_v3  ;;  %v2876_v21 = vadd.f32 %v2875_v17, %v4848_v16  ;;  %v2946_v53 = vpop.f32.mrf.mxu0 }
 0x475   : > { %v3003_v41 = vadd.f32 %v2984_v52, %v2945_v58  ;;  %v2947_v25 = vadd.f32 %v2946_v53, %v4848_v16  ;;  %v1954_v16 = vadd.f32 %v4851_v12, %v4846_v36 }
 0x476   : > { %v3009_v1 = vmax.f32 %v3001_v50, 0.0  ;;  %v3002_v51 = vadd.f32 %v2991_v11, %v2876_v21 }
 0x477   : > { %v3011_v7 = vmax.f32 %v3003_v41, 0.0  ;;  %v3004_v6 = vadd.f32 %v2992_v49, %v2947_v25 }
 0x478   : > { %v3017_v37 = vadd.f32 %v3009_v1, %v1951_v55  ;;  %v3010_v19 = vmax.f32 %v3002_v51, 0.0 }
 0x479   : > { %v3019_v48 = vadd.f32 %v3011_v7, %v1953_v18  ;;  %v3012_v40 = vmax.f32 %v3004_v6, 0.0 }
 0x47a   : > { %v3018_v45 = vadd.f32 %v3010_v19, %v1952_v15  ;;  %v3063_v4 = vcombine.low %v3009_v1, %v3010_v19  ;;  %v3025_v47 = vmax.f32 %v3017_v37, 0.0 }
 0x47b   : > { %v3020_v32 = vadd.f32 %v3012_v40, %v1954_v16  ;;  %v3064_v57 = vcombine.low %v3011_v7, %v3012_v40  ;;  %v3027_v63 = vmax.f32 %v3019_v48, 0.0 }
 0x47c   : > { %v3026_v42 = vmax.f32 %v3018_v45, 0.0  ;;  %3071 = vst [vmem:[%s4863_s16 + $0x10] sm:$0xff] %v3063_v4 }
 0x47d   : > { %v3028_v24 = vmax.f32 %v3020_v32, 0.0  ;;  %3072 = vst [vmem:[%s4863_s16 + $0x18] sm:$0xff] %v3064_v57 }
 0x47e   : > { %v3039_v9 = vcombine.low %v3025_v47, %v3026_v42 }
 0x47f   : > { %v3040_v46 = vcombine.low %v3027_v63, %v3028_v24 }
 0x480   : > { %3047 = vst [vmem:[%s4870_s25 + $0x10] sm:$0xff] %v3039_v9 }
 0x481   : > { %3048 = vst [vmem:[%s4870_s25 + $0x18] sm:$0xff] %v3040_v46 }
 0x482 PF: > { %s25_s29 = sadd.s32 1, %s3467_s29  }
 0x483   : > { %p22_p5 = scmp.ge.s32.totalorder %s25_s29, 4  }
 0x485   :  { %24 = sbr.rel (!%p22_p5) target bundleno = 1 (0x1), region = 139 }

</bundles_post_ra>
